<compile_context>
chip_gen: v6e
topology: v6e:2x2x1
jax: 0.10.0
libtpu: 0.0.40
codegen_flags: <defaults>
</compile_context>

<pallas_src>
import jax
import jax.numpy as jnp
from jax.experimental import pallas as pl
from jax.experimental.pallas import tpu as pltpu


# ---------------------------------------------------------------------------
# Kernel
# ---------------------------------------------------------------------------
def _pointgencon_residual_kernel(
        x_ref,
        # block 1 (residual=True)
        w11_ref, b11_ref, w21_ref, b21_ref, w31_ref, b31_ref,
        # block 2 (residual=True); conv1 split into coords part + features part
        w1c2_ref, w1f2_ref, b12_ref, w22_ref, b22_ref, w32_ref, b32_ref,
        # block 3 (residual=False); final x200 already folded into w33/b33
        w1c3_ref, w1f3_ref, b13_ref, w23_ref, b23_ref, w33_ref, b33_ref,
        o_ref):
    f32 = jnp.float32
    bf16 = jnp.bfloat16

    def mm(w_ref, a):
        # (C_out, C_in) @ (C_in, TILE_L) on the MXU with f32 accumulation.
        return jnp.dot(w_ref[...], a, preferred_element_type=f32)

    x = x_ref[0]                           # (B, TILE_L), bf16
    coords = x[:3, :].astype(f32)          # (3, TILE_L)

    # ---- DecoderBlock 1 (conv+BN folded; residual add of input coords) ----
    h = jnp.maximum(mm(w11_ref, x) + b11_ref[...], 0.0)
    h = jnp.maximum(mm(w21_ref, h.astype(bf16)) + b21_ref[...], 0.0)
    c = mm(w31_ref, h.astype(bf16)) + b31_ref[...] + coords     # (3, TILE_L)

    # ---- DecoderBlock 2: input is cat([c, features]) -> split matmul ----
    h = jnp.maximum(mm(w1f2_ref, x) + mm(w1c2_ref, c.astype(bf16))
                    + b12_ref[...], 0.0)
    h = jnp.maximum(mm(w22_ref, h.astype(bf16)) + b22_ref[...], 0.0)
    c = mm(w32_ref, h.astype(bf16)) + b32_ref[...] + c

    # ---- DecoderBlock 3: no residual; out_factor folded into w33/b33 ----
    h = jnp.maximum(mm(w1f3_ref, x) + mm(w1c3_ref, c.astype(bf16))
                    + b13_ref[...], 0.0)
    h = jnp.maximum(mm(w23_ref, h.astype(bf16)) + b23_ref[...], 0.0)
    out = mm(w33_ref, h.astype(bf16)) + b33_ref[...]            # (3, TILE_L)

    o_ref[0] = out.astype(o_ref.dtype)


# ---------------------------------------------------------------------------
# Wrapper
# ---------------------------------------------------------------------------
def _choose_tile_l(L):
    for t in (512, 256, 128):
        if L % t == 0:
            return t
    return L  # full-L block (always legal: block dim == full array dim)


def pointgencon_residual_forward(x_ncl, kernel_params):
    """x_ncl: (N, bottleneck, L) float32 -> (N, 3, L) float32 (PyTorch layout)."""
    N, B, L = x_ncl.shape
    tile_l = _choose_tile_l(L)
    grid = (N, L // tile_l)

    x_bf16 = x_ncl.astype(jnp.bfloat16)

    def wspec(shape):
        nd = len(shape)
        return pl.BlockSpec(shape, lambda n, l: (0,) * nd)   # resident weights

    in_specs = [pl.BlockSpec((1, B, tile_l), lambda n, l: (n, 0, l))]
    in_specs += [wspec(p.shape) for p in kernel_params]

    return pl.pallas_call(
        _pointgencon_residual_kernel,
        out_shape=jax.ShapeDtypeStruct((N, 3, L), jnp.float32),
        grid=grid,
        in_specs=in_specs,
        out_specs=pl.BlockSpec((1, 3, tile_l), lambda n, l: (n, 0, l)),
        compiler_params=pltpu.CompilerParams(
            dimension_semantics=("parallel", "parallel"),
            vmem_limit_bytes=32 * 1024 * 1024),
    )(x_bf16, *kernel_params)


# ---------------------------------------------------------------------------
# Parameters (synthetic, deterministic) + one-time folding into kernel form
# ---------------------------------------------------------------------------
def init_raw_params(key, bottleneck_size, res_size):
    """PyTorch-style params for the three DecoderBlocks (eval-mode BN stats)."""
    B, R = bottleneck_size, res_size

    def block_params(k):
        ks = jax.random.split(k, 14)

        def w(kk, o, i, s=0.05):
            return s * jax.random.normal(kk, (o, i), jnp.float32)

        def v(kk, o, s=0.05):
            return s * jax.random.normal(kk, (o,), jnp.float32)

        return dict(
            w1=w(ks[0], R, B), b1=v(ks[1], R),
            w2=w(ks[2], R, R), b2=v(ks[3], R),
            w3=w(ks[4], 3, R), b3=v(ks[5], 3),
            g1=1.0 + 0.1 * jax.random.normal(ks[6], (R,), jnp.float32),
            be1=0.1 * jax.random.normal(ks[7], (R,), jnp.float32),
            m1=0.1 * jax.random.normal(ks[8], (R,), jnp.float32),
            v1=jnp.abs(1.0 + 0.1 * jax.random.normal(ks[9], (R,), jnp.float32)),
            g2=1.0 + 0.1 * jax.random.normal(ks[10], (R,), jnp.float32),
            be2=0.1 * jax.random.normal(ks[11], (R,), jnp.float32),
            m2=0.1 * jax.random.normal(ks[12], (R,), jnp.float32),
            v2=jnp.abs(1.0 + 0.1 * jax.random.normal(ks[13], (R,), jnp.float32)),
        )

    return [block_params(k) for k in jax.random.split(key, 3)]


def prepare_kernel_params(raw, out_factor, eps=1e-5):
    """Fold eval-mode BN + final out_factor, split concat weights, cast to bf16."""
    bf16 = jnp.bfloat16

    def fold(w, b, gamma, beta, mean, var):
        s = gamma / jnp.sqrt(var + eps)
        return w * s[:, None], s * b + beta - s * mean

    def col(v):  # per-channel bias as an f32 (C, 1) column (channel on sublane)
        return v.reshape(-1, 1).astype(jnp.float32)

    kp = []
    for i, p in enumerate(raw):
        w1, b1 = fold(p["w1"], p["b1"], p["g1"], p["be1"], p["m1"], p["v1"])
        w2, b2 = fold(p["w2"], p["b2"], p["g2"], p["be2"], p["m2"], p["v2"])
        w3, b3 = p["w3"], p["b3"]
        if i == 2:  # PointGenConResidual final `out_factor * x` (pred_scale=False)
            w3 = w3 * out_factor
            b3 = b3 * out_factor
        if i == 0:
            kp += [w1.astype(bf16), col(b1),
                   w2.astype(bf16), col(b2),
                   w3.astype(bf16), col(b3)]
        else:
            w1c = w1[:, :3]                 # coords part of conv1
            w1f = w1.at[:, :3].set(0.0)     # features part (coord cols zeroed)
            kp += [w1c.astype(bf16), w1f.astype(bf16), col(b1),
                   w2.astype(bf16), col(b2),
                   w3.astype(bf16), col(b3)]
    return tuple(kp)


# ---------------------------------------------------------------------------
# References
# ---------------------------------------------------------------------------
def _reference_module(x, raw, out_factor, eps=1e-5):
    """Plain-JAX f32 transcription of PointGenConResidual.forward (eval-mode BN)."""
    hi = jax.lax.Precision.HIGHEST

    def bn(z, g, b, m, v):
        return (g[None, :, None] * (z - m[None, :, None])
                / jnp.sqrt(v[None, :, None] + eps) + b[None, :, None])

    def conv(w, b, a):  # 1x1 Conv1d over the channel dim of (N, C, L)
        return jnp.einsum('oi,nil->nol', w, a, precision=hi) + b[None, :, None]

    def block(inp, p, residual):
        coords = inp[:, :3]
        h = jax.nn.relu(bn(conv(p["w1"], p["b1"], inp),
                           p["g1"], p["be1"], p["m1"], p["v1"]))
        h = jax.nn.relu(bn(conv(p["w2"], p["b2"], h),
                           p["g2"], p["be2"], p["m2"], p["v2"]))
        out = conv(p["w3"], p["b3"], h)
        return out + coords if residual else out   # block out_factor == 1

    features = x[:, 3:]
    o = block(x, raw[0], True)
    o = block(jnp.concatenate([o, features], axis=1), raw[1], True)
    o = block(jnp.concatenate([o, features], axis=1), raw[2], False)
    return out_factor * o


def _reference_folded(x, kparams):
    """Mirrors the kernel math (bf16 operands, f32 accumulation) in plain JAX."""
    (w11, b11, w21, b21, w31, b31,
     w1c2, w1f2, b12, w22, b22, w32, b32,
     w1c3, w1f3, b13, w23, b23, w33, b33) = [p.astype(jnp.float32) for p in kparams]
    hi = jax.lax.Precision.HIGHEST
    xr = x.astype(jnp.bfloat16).astype(jnp.float32)

    def mm(w, a):
        return jnp.einsum('oi,nil->nol', w, a, precision=hi)

    def q(a):  # bf16 round-trip, mirroring the in-kernel operand casts
        return a.astype(jnp.bfloat16).astype(jnp.float32)

    def ab(z, b):
        return z + b[None]

    coords = xr[:, :3]
    h = jax.nn.relu(ab(mm(w11, xr), b11))
    h = jax.nn.relu(ab(mm(w21, q(h)), b21))
    c = ab(mm(w31, q(h)), b31) + coords

    h = jax.nn.relu(ab(mm(w1f2, xr) + mm(w1c2, q(c)), b12))
    h = jax.nn.relu(ab(mm(w22, q(h)), b22))
    c = ab(mm(w32, q(h)), b32) + c

    h = jax.nn.relu(ab(mm(w1f3, xr) + mm(w1c3, q(c)), b13))
    h = jax.nn.relu(ab(mm(w23, q(h)), b23))
    return ab(mm(w33, q(h)), b33)


# ---------------------------------------------------------------------------
if __name__ == "__main__":
    # Small shapes consistent with the module: bottleneck = 3 coords + features.
    N, B, R, L = 2, 131, 64, 512
    out_factor = 200.0

    key = jax.random.PRNGKey(0)
    kx, kp = jax.random.split(key)
    x = jax.random.normal(kx, (N, B, L), jnp.float32)   # (N, bottleneck, L)
    raw = init_raw_params(kp, B, R)
    kparams = prepare_kernel_params(raw, out_factor)

    out = pointgencon_residual_forward(x, kparams)
    out = jax.block_until_ready(out)
    assert out.shape == (N, 3, L)

    # Tight check: same bf16 operands / f32 accumulation as the kernel.
    ref_tight = _reference_folded(x, kparams)
    assert jnp.allclose(out, ref_tight, atol=1e-2, rtol=1e-3), \
        float(jnp.max(jnp.abs(out - ref_tight)))

    # Loose check vs. the full f32 module semantics (bf16 quantization noise only).
    ref_module = _reference_module(x, raw, out_factor)
    assert jnp.allclose(out, ref_module, atol=1.5, rtol=5e-2), \
        float(jnp.max(jnp.abs(out - ref_module)))

    print("KERNEL_OK")
</pallas_src>

<mosaic_0001>
module attributes {stable_mosaic.version = 11 : i64} {
  func.func @_pointgencon_residual_kernel(%arg0: i32, %arg1: i32, %arg2: memref<1x131x512xbf16, #tpu.memory_space<vmem>>, %arg3: memref<64x131xbf16, #tpu.memory_space<vmem>>, %arg4: memref<64x1xf32, #tpu.memory_space<vmem>>, %arg5: memref<64x64xbf16, #tpu.memory_space<vmem>>, %arg6: memref<64x1xf32, #tpu.memory_space<vmem>>, %arg7: memref<3x64xbf16, #tpu.memory_space<vmem>>, %arg8: memref<3x1xf32, #tpu.memory_space<vmem>>, %arg9: memref<64x3xbf16, #tpu.memory_space<vmem>>, %arg10: memref<64x131xbf16, #tpu.memory_space<vmem>>, %arg11: memref<64x1xf32, #tpu.memory_space<vmem>>, %arg12: memref<64x64xbf16, #tpu.memory_space<vmem>>, %arg13: memref<64x1xf32, #tpu.memory_space<vmem>>, %arg14: memref<3x64xbf16, #tpu.memory_space<vmem>>, %arg15: memref<3x1xf32, #tpu.memory_space<vmem>>, %arg16: memref<64x3xbf16, #tpu.memory_space<vmem>>, %arg17: memref<64x131xbf16, #tpu.memory_space<vmem>>, %arg18: memref<64x1xf32, #tpu.memory_space<vmem>>, %arg19: memref<64x64xbf16, #tpu.memory_space<vmem>>, %arg20: memref<64x1xf32, #tpu.memory_space<vmem>>, %arg21: memref<3x64xbf16, #tpu.memory_space<vmem>>, %arg22: memref<3x1xf32, #tpu.memory_space<vmem>>, %arg23: memref<1x3x512xf32, #tpu.memory_space<vmem>>) attributes {dimension_semantics = [#tpu.dimension_semantics<parallel>, #tpu.dimension_semantics<parallel>], iteration_bounds = array<i64: 2, 1>, scalar_prefetch = 0 : i64, scratch_operands = 0 : i64, tpu.core_type = #tpu.core_type<tc>, window_params = [{transform_indices = @transform_0, window_bounds = array<i64: 1, 131, 512>}, {pipeline_mode = #tpu.pipeline_mode<synchronous>, transform_indices = @transform_1, window_bounds = array<i64: 64, 131>}, {pipeline_mode = #tpu.pipeline_mode<synchronous>, transform_indices = @transform_2, window_bounds = array<i64: 64, 1>}, {pipeline_mode = #tpu.pipeline_mode<synchronous>, transform_indices = @transform_3, window_bounds = array<i64: 64, 64>}, {pipeline_mode = #tpu.pipeline_mode<synchronous>, transform_indices = @transform_4, window_bounds = array<i64: 64, 1>}, {pipeline_mode = #tpu.pipeline_mode<synchronous>, transform_indices = @transform_5, window_bounds = array<i64: 3, 64>}, {pipeline_mode = #tpu.pipeline_mode<synchronous>, transform_indices = @transform_6, window_bounds = array<i64: 3, 1>}, {pipeline_mode = #tpu.pipeline_mode<synchronous>, transform_indices = @transform_7, window_bounds = array<i64: 64, 3>}, {pipeline_mode = #tpu.pipeline_mode<synchronous>, transform_indices = @transform_8, window_bounds = array<i64: 64, 131>}, {pipeline_mode = #tpu.pipeline_mode<synchronous>, transform_indices = @transform_9, window_bounds = array<i64: 64, 1>}, {pipeline_mode = #tpu.pipeline_mode<synchronous>, transform_indices = @transform_10, window_bounds = array<i64: 64, 64>}, {pipeline_mode = #tpu.pipeline_mode<synchronous>, transform_indices = @transform_11, window_bounds = array<i64: 64, 1>}, {pipeline_mode = #tpu.pipeline_mode<synchronous>, transform_indices = @transform_12, window_bounds = array<i64: 3, 64>}, {pipeline_mode = #tpu.pipeline_mode<synchronous>, transform_indices = @transform_13, window_bounds = array<i64: 3, 1>}, {pipeline_mode = #tpu.pipeline_mode<synchronous>, transform_indices = @transform_14, window_bounds = array<i64: 64, 3>}, {pipeline_mode = #tpu.pipeline_mode<synchronous>, transform_indices = @transform_15, window_bounds = array<i64: 64, 131>}, {pipeline_mode = #tpu.pipeline_mode<synchronous>, transform_indices = @transform_16, window_bounds = array<i64: 64, 1>}, {pipeline_mode = #tpu.pipeline_mode<synchronous>, transform_indices = @transform_17, window_bounds = array<i64: 64, 64>}, {pipeline_mode = #tpu.pipeline_mode<synchronous>, transform_indices = @transform_18, window_bounds = array<i64: 64, 1>}, {pipeline_mode = #tpu.pipeline_mode<synchronous>, transform_indices = @transform_19, window_bounds = array<i64: 3, 64>}, {pipeline_mode = #tpu.pipeline_mode<synchronous>, transform_indices = @transform_20, window_bounds = array<i64: 3, 1>}, {transform_indices = @transform_21, window_bounds = array<i64: 1, 3, 512>}]} {
    %c0 = arith.constant 0 : index
    %c0_0 = arith.constant 0 : index
    %c0_1 = arith.constant 0 : index
    %0 = vector.load %arg2[%c0, %c0_0, %c0_1] : memref<1x131x512xbf16, #tpu.memory_space<vmem>>, vector<1x131x512xbf16>
    %1 = vector.shape_cast %0 : vector<1x131x512xbf16> to vector<131x512xbf16>
    %2 = vector.extract_strided_slice %1 {offsets = [0, 0], sizes = [3, 512], strides = [1, 1]} : vector<131x512xbf16> to vector<3x512xbf16>
    %3 = arith.extf %2 : vector<3x512xbf16> to vector<3x512xf32>
    %c0_2 = arith.constant 0 : index
    %c0_3 = arith.constant 0 : index
    %4 = vector.load %arg3[%c0_2, %c0_3] : memref<64x131xbf16, #tpu.memory_space<vmem>>, vector<64x131xbf16>
    %cst = arith.constant dense<0.000000e+00> : vector<64x512xf32>
    %5 = tpu.matmul %4, %1, %cst {dimension_numbers = #tpu.dot_dimension_numbers<[1], [0], [0], [1], [0, 0, 1, 1], [], []>} : vector<64x131xbf16>, vector<131x512xbf16>, vector<64x512xf32> -> vector<64x512xf32>
    %c0_4 = arith.constant 0 : index
    %c0_5 = arith.constant 0 : index
    %6 = vector.load %arg4[%c0_4, %c0_5] : memref<64x1xf32, #tpu.memory_space<vmem>>, vector<64x1xf32>
    %7 = vector.broadcast %6 : vector<64x1xf32> to vector<64x512xf32>
    %8 = arith.addf %5, %7 : vector<64x512xf32>
    %cst_6 = arith.constant 0.000000e+00 : f32
    %9 = vector.broadcast %cst_6 : f32 to vector<64x512xf32>
    %10 = arith.maximumf %8, %9 : vector<64x512xf32>
    %11 = arith.truncf %10 : vector<64x512xf32> to vector<64x512xbf16>
    %c0_7 = arith.constant 0 : index
    %c0_8 = arith.constant 0 : index
    %12 = vector.load %arg5[%c0_7, %c0_8] : memref<64x64xbf16, #tpu.memory_space<vmem>>, vector<64x64xbf16>
    %cst_9 = arith.constant dense<0.000000e+00> : vector<64x512xf32>
    %13 = tpu.matmul %12, %11, %cst_9 {dimension_numbers = #tpu.dot_dimension_numbers<[1], [0], [0], [1], [0, 0, 1, 1], [], []>} : vector<64x64xbf16>, vector<64x512xbf16>, vector<64x512xf32> -> vector<64x512xf32>
    %c0_10 = arith.constant 0 : index
    %c0_11 = arith.constant 0 : index
    %14 = vector.load %arg6[%c0_10, %c0_11] : memref<64x1xf32, #tpu.memory_space<vmem>>, vector<64x1xf32>
    %15 = vector.broadcast %14 : vector<64x1xf32> to vector<64x512xf32>
    %16 = arith.addf %13, %15 : vector<64x512xf32>
    %cst_12 = arith.constant 0.000000e+00 : f32
    %17 = vector.broadcast %cst_12 : f32 to vector<64x512xf32>
    %18 = arith.maximumf %16, %17 : vector<64x512xf32>
    %19 = arith.truncf %18 : vector<64x512xf32> to vector<64x512xbf16>
    %c0_13 = arith.constant 0 : index
    %c0_14 = arith.constant 0 : index
    %20 = vector.load %arg7[%c0_13, %c0_14] : memref<3x64xbf16, #tpu.memory_space<vmem>>, vector<3x64xbf16>
    %cst_15 = arith.constant dense<0.000000e+00> : vector<3x512xf32>
    %21 = tpu.matmul %20, %19, %cst_15 {dimension_numbers = #tpu.dot_dimension_numbers<[1], [0], [0], [1], [0, 0, 1, 1], [], []>} : vector<3x64xbf16>, vector<64x512xbf16>, vector<3x512xf32> -> vector<3x512xf32>
    %c0_16 = arith.constant 0 : index
    %c0_17 = arith.constant 0 : index
    %22 = vector.load %arg8[%c0_16, %c0_17] : memref<3x1xf32, #tpu.memory_space<vmem>>, vector<3x1xf32>
    %23 = vector.broadcast %22 : vector<3x1xf32> to vector<3x512xf32>
    %24 = arith.addf %21, %23 : vector<3x512xf32>
    %25 = arith.addf %24, %3 : vector<3x512xf32>
    %c0_18 = arith.constant 0 : index
    %c0_19 = arith.constant 0 : index
    %26 = vector.load %arg10[%c0_18, %c0_19] : memref<64x131xbf16, #tpu.memory_space<vmem>>, vector<64x131xbf16>
    %cst_20 = arith.constant dense<0.000000e+00> : vector<64x512xf32>
    %27 = tpu.matmul %26, %1, %cst_20 {dimension_numbers = #tpu.dot_dimension_numbers<[1], [0], [0], [1], [0, 0, 1, 1], [], []>} : vector<64x131xbf16>, vector<131x512xbf16>, vector<64x512xf32> -> vector<64x512xf32>
    %28 = arith.truncf %25 : vector<3x512xf32> to vector<3x512xbf16>
    %c0_21 = arith.constant 0 : index
    %c0_22 = arith.constant 0 : index
    %29 = vector.load %arg9[%c0_21, %c0_22] : memref<64x3xbf16, #tpu.memory_space<vmem>>, vector<64x3xbf16>
    %cst_23 = arith.constant dense<0.000000e+00> : vector<64x512xf32>
    %30 = tpu.matmul %29, %28, %cst_23 {dimension_numbers = #tpu.dot_dimension_numbers<[1], [0], [0], [1], [0, 0, 1, 1], [], []>} : vector<64x3xbf16>, vector<3x512xbf16>, vector<64x512xf32> -> vector<64x512xf32>
    %31 = arith.addf %27, %30 : vector<64x512xf32>
    %c0_24 = arith.constant 0 : index
    %c0_25 = arith.constant 0 : index
    %32 = vector.load %arg11[%c0_24, %c0_25] : memref<64x1xf32, #tpu.memory_space<vmem>>, vector<64x1xf32>
    %33 = vector.broadcast %32 : vector<64x1xf32> to vector<64x512xf32>
    %34 = arith.addf %31, %33 : vector<64x512xf32>
    %cst_26 = arith.constant 0.000000e+00 : f32
    %35 = vector.broadcast %cst_26 : f32 to vector<64x512xf32>
    %36 = arith.maximumf %34, %35 : vector<64x512xf32>
    %37 = arith.truncf %36 : vector<64x512xf32> to vector<64x512xbf16>
    %c0_27 = arith.constant 0 : index
    %c0_28 = arith.constant 0 : index
    %38 = vector.load %arg12[%c0_27, %c0_28] : memref<64x64xbf16, #tpu.memory_space<vmem>>, vector<64x64xbf16>
    %cst_29 = arith.constant dense<0.000000e+00> : vector<64x512xf32>
    %39 = tpu.matmul %38, %37, %cst_29 {dimension_numbers = #tpu.dot_dimension_numbers<[1], [0], [0], [1], [0, 0, 1, 1], [], []>} : vector<64x64xbf16>, vector<64x512xbf16>, vector<64x512xf32> -> vector<64x512xf32>
    %c0_30 = arith.constant 0 : index
    %c0_31 = arith.constant 0 : index
    %40 = vector.load %arg13[%c0_30, %c0_31] : memref<64x1xf32, #tpu.memory_space<vmem>>, vector<64x1xf32>
    %41 = vector.broadcast %40 : vector<64x1xf32> to vector<64x512xf32>
    %42 = arith.addf %39, %41 : vector<64x512xf32>
    %cst_32 = arith.constant 0.000000e+00 : f32
    %43 = vector.broadcast %cst_32 : f32 to vector<64x512xf32>
    %44 = arith.maximumf %42, %43 : vector<64x512xf32>
    %45 = arith.truncf %44 : vector<64x512xf32> to vector<64x512xbf16>
    %c0_33 = arith.constant 0 : index
    %c0_34 = arith.constant 0 : index
    %46 = vector.load %arg14[%c0_33, %c0_34] : memref<3x64xbf16, #tpu.memory_space<vmem>>, vector<3x64xbf16>
    %cst_35 = arith.constant dense<0.000000e+00> : vector<3x512xf32>
    %47 = tpu.matmul %46, %45, %cst_35 {dimension_numbers = #tpu.dot_dimension_numbers<[1], [0], [0], [1], [0, 0, 1, 1], [], []>} : vector<3x64xbf16>, vector<64x512xbf16>, vector<3x512xf32> -> vector<3x512xf32>
    %c0_36 = arith.constant 0 : index
    %c0_37 = arith.constant 0 : index
    %48 = vector.load %arg15[%c0_36, %c0_37] : memref<3x1xf32, #tpu.memory_space<vmem>>, vector<3x1xf32>
    %49 = vector.broadcast %48 : vector<3x1xf32> to vector<3x512xf32>
    %50 = arith.addf %47, %49 : vector<3x512xf32>
    %51 = arith.addf %50, %25 : vector<3x512xf32>
    %c0_38 = arith.constant 0 : index
    %c0_39 = arith.constant 0 : index
    %52 = vector.load %arg17[%c0_38, %c0_39] : memref<64x131xbf16, #tpu.memory_space<vmem>>, vector<64x131xbf16>
    %cst_40 = arith.constant dense<0.000000e+00> : vector<64x512xf32>
    %53 = tpu.matmul %52, %1, %cst_40 {dimension_numbers = #tpu.dot_dimension_numbers<[1], [0], [0], [1], [0, 0, 1, 1], [], []>} : vector<64x131xbf16>, vector<131x512xbf16>, vector<64x512xf32> -> vector<64x512xf32>
    %54 = arith.truncf %51 : vector<3x512xf32> to vector<3x512xbf16>
    %c0_41 = arith.constant 0 : index
    %c0_42 = arith.constant 0 : index
    %55 = vector.load %arg16[%c0_41, %c0_42] : memref<64x3xbf16, #tpu.memory_space<vmem>>, vector<64x3xbf16>
    %cst_43 = arith.constant dense<0.000000e+00> : vector<64x512xf32>
    %56 = tpu.matmul %55, %54, %cst_43 {dimension_numbers = #tpu.dot_dimension_numbers<[1], [0], [0], [1], [0, 0, 1, 1], [], []>} : vector<64x3xbf16>, vector<3x512xbf16>, vector<64x512xf32> -> vector<64x512xf32>
    %57 = arith.addf %53, %56 : vector<64x512xf32>
    %c0_44 = arith.constant 0 : index
    %c0_45 = arith.constant 0 : index
    %58 = vector.load %arg18[%c0_44, %c0_45] : memref<64x1xf32, #tpu.memory_space<vmem>>, vector<64x1xf32>
    %59 = vector.broadcast %58 : vector<64x1xf32> to vector<64x512xf32>
    %60 = arith.addf %57, %59 : vector<64x512xf32>
    %cst_46 = arith.constant 0.000000e+00 : f32
    %61 = vector.broadcast %cst_46 : f32 to vector<64x512xf32>
    %62 = arith.maximumf %60, %61 : vector<64x512xf32>
    %63 = arith.truncf %62 : vector<64x512xf32> to vector<64x512xbf16>
    %c0_47 = arith.constant 0 : index
    %c0_48 = arith.constant 0 : index
    %64 = vector.load %arg19[%c0_47, %c0_48] : memref<64x64xbf16, #tpu.memory_space<vmem>>, vector<64x64xbf16>
    %cst_49 = arith.constant dense<0.000000e+00> : vector<64x512xf32>
    %65 = tpu.matmul %64, %63, %cst_49 {dimension_numbers = #tpu.dot_dimension_numbers<[1], [0], [0], [1], [0, 0, 1, 1], [], []>} : vector<64x64xbf16>, vector<64x512xbf16>, vector<64x512xf32> -> vector<64x512xf32>
    %c0_50 = arith.constant 0 : index
    %c0_51 = arith.constant 0 : index
    %66 = vector.load %arg20[%c0_50, %c0_51] : memref<64x1xf32, #tpu.memory_space<vmem>>, vector<64x1xf32>
    %67 = vector.broadcast %66 : vector<64x1xf32> to vector<64x512xf32>
    %68 = arith.addf %65, %67 : vector<64x512xf32>
    %cst_52 = arith.constant 0.000000e+00 : f32
    %69 = vector.broadcast %cst_52 : f32 to vector<64x512xf32>
    %70 = arith.maximumf %68, %69 : vector<64x512xf32>
    %71 = arith.truncf %70 : vector<64x512xf32> to vector<64x512xbf16>
    %c0_53 = arith.constant 0 : index
    %c0_54 = arith.constant 0 : index
    %72 = vector.load %arg21[%c0_53, %c0_54] : memref<3x64xbf16, #tpu.memory_space<vmem>>, vector<3x64xbf16>
    %cst_55 = arith.constant dense<0.000000e+00> : vector<3x512xf32>
    %73 = tpu.matmul %72, %71, %cst_55 {dimension_numbers = #tpu.dot_dimension_numbers<[1], [0], [0], [1], [0, 0, 1, 1], [], []>} : vector<3x64xbf16>, vector<64x512xbf16>, vector<3x512xf32> -> vector<3x512xf32>
    %c0_56 = arith.constant 0 : index
    %c0_57 = arith.constant 0 : index
    %74 = vector.load %arg22[%c0_56, %c0_57] : memref<3x1xf32, #tpu.memory_space<vmem>>, vector<3x1xf32>
    %75 = vector.broadcast %74 : vector<3x1xf32> to vector<3x512xf32>
    %76 = arith.addf %73, %75 : vector<3x512xf32>
    %c0_58 = arith.constant 0 : index
    %c0_59 = arith.constant 0 : index
    %c0_60 = arith.constant 0 : index
    %77 = vector.load %arg23[%c0_58, %c0_59, %c0_60] : memref<1x3x512xf32, #tpu.memory_space<vmem>>, vector<1x3x512xf32>
    %78 = vector.shape_cast %77 : vector<1x3x512xf32> to vector<3x512xf32>
    %79 = vector.shape_cast %76 : vector<3x512xf32> to vector<1x3x512xf32>
    tpu.vector_store %arg23[%c0_58, %c0_59, %c0_60], %79 {strides = array<i32>} : memref<1x3x512xf32, #tpu.memory_space<vmem>>, vector<1x3x512xf32>,
    return
  }
  func.func @transform_0(%arg0: i32, %arg1: i32) -> (i32, i32, i32) {
    %c0_i32 = arith.constant 0 : i32
    %c0_i32_0 = arith.constant 0 : i32
    return %arg0, %c0_i32, %arg1 : i32, i32, i32
  }
  func.func @transform_1(%arg0: i32, %arg1: i32) -> (i32, i32) {
    %c0_i32 = arith.constant 0 : i32
    %c0_i32_0 = arith.constant 0 : i32
    %c0_i32_1 = arith.constant 0 : i32
    return %c0_i32, %c0_i32_0 : i32, i32
  }
  func.func @transform_2(%arg0: i32, %arg1: i32) -> (i32, i32) {
    %c0_i32 = arith.constant 0 : i32
    %c0_i32_0 = arith.constant 0 : i32
    %c0_i32_1 = arith.constant 0 : i32
    return %c0_i32, %c0_i32_0 : i32, i32
  }
  func.func @transform_3(%arg0: i32, %arg1: i32) -> (i32, i32) {
    %c0_i32 = arith.constant 0 : i32
    %c0_i32_0 = arith.constant 0 : i32
    %c0_i32_1 = arith.constant 0 : i32
    return %c0_i32, %c0_i32_0 : i32, i32
  }
  func.func @transform_4(%arg0: i32, %arg1: i32) -> (i32, i32) {
    %c0_i32 = arith.constant 0 : i32
    %c0_i32_0 = arith.constant 0 : i32
    %c0_i32_1 = arith.constant 0 : i32
    return %c0_i32, %c0_i32_0 : i32, i32
  }
  func.func @transform_5(%arg0: i32, %arg1: i32) -> (i32, i32) {
    %c0_i32 = arith.constant 0 : i32
    %c0_i32_0 = arith.constant 0 : i32
    %c0_i32_1 = arith.constant 0 : i32
    return %c0_i32, %c0_i32_0 : i32, i32
  }
  func.func @transform_6(%arg0: i32, %arg1: i32) -> (i32, i32) {
    %c0_i32 = arith.constant 0 : i32
    %c0_i32_0 = arith.constant 0 : i32
    %c0_i32_1 = arith.constant 0 : i32
    return %c0_i32, %c0_i32_0 : i32, i32
  }
  func.func @transform_7(%arg0: i32, %arg1: i32) -> (i32, i32) {
    %c0_i32 = arith.constant 0 : i32
    %c0_i32_0 = arith.constant 0 : i32
    %c0_i32_1 = arith.constant 0 : i32
    return %c0_i32, %c0_i32_0 : i32, i32
  }
  func.func @transform_8(%arg0: i32, %arg1: i32) -> (i32, i32) {
    %c0_i32 = arith.constant 0 : i32
    %c0_i32_0 = arith.constant 0 : i32
    %c0_i32_1 = arith.constant 0 : i32
    return %c0_i32, %c0_i32_0 : i32, i32
  }
  func.func @transform_9(%arg0: i32, %arg1: i32) -> (i32, i32) {
    %c0_i32 = arith.constant 0 : i32
    %c0_i32_0 = arith.constant 0 : i32
    %c0_i32_1 = arith.constant 0 : i32
    return %c0_i32, %c0_i32_0 : i32, i32
  }
  func.func @transform_10(%arg0: i32, %arg1: i32) -> (i32, i32) {
    %c0_i32 = arith.constant 0 : i32
    %c0_i32_0 = arith.constant 0 : i32
    %c0_i32_1 = arith.constant 0 : i32
    return %c0_i32, %c0_i32_0 : i32, i32
  }
  func.func @transform_11(%arg0: i32, %arg1: i32) -> (i32, i32) {
    %c0_i32 = arith.constant 0 : i32
    %c0_i32_0 = arith.constant 0 : i32
    %c0_i32_1 = arith.constant 0 : i32
    return %c0_i32, %c0_i32_0 : i32, i32
  }
  func.func @transform_12(%arg0: i32, %arg1: i32) -> (i32, i32) {
    %c0_i32 = arith.constant 0 : i32
    %c0_i32_0 = arith.constant 0 : i32
    %c0_i32_1 = arith.constant 0 : i32
    return %c0_i32, %c0_i32_0 : i32, i32
  }
  func.func @transform_13(%arg0: i32, %arg1: i32) -> (i32, i32) {
    %c0_i32 = arith.constant 0 : i32
    %c0_i32_0 = arith.constant 0 : i32
    %c0_i32_1 = arith.constant 0 : i32
    return %c0_i32, %c0_i32_0 : i32, i32
  }
  func.func @transform_14(%arg0: i32, %arg1: i32) -> (i32, i32) {
    %c0_i32 = arith.constant 0 : i32
    %c0_i32_0 = arith.constant 0 : i32
    %c0_i32_1 = arith.constant 0 : i32
    return %c0_i32, %c0_i32_0 : i32, i32
  }
  func.func @transform_15(%arg0: i32, %arg1: i32) -> (i32, i32) {
    %c0_i32 = arith.constant 0 : i32
    %c0_i32_0 = arith.constant 0 : i32
    %c0_i32_1 = arith.constant 0 : i32
    return %c0_i32, %c0_i32_0 : i32, i32
  }
  func.func @transform_16(%arg0: i32, %arg1: i32) -> (i32, i32) {
    %c0_i32 = arith.constant 0 : i32
    %c0_i32_0 = arith.constant 0 : i32
    %c0_i32_1 = arith.constant 0 : i32
    return %c0_i32, %c0_i32_0 : i32, i32
  }
  func.func @transform_17(%arg0: i32, %arg1: i32) -> (i32, i32) {
    %c0_i32 = arith.constant 0 : i32
    %c0_i32_0 = arith.constant 0 : i32
    %c0_i32_1 = arith.constant 0 : i32
    return %c0_i32, %c0_i32_0 : i32, i32
  }
  func.func @transform_18(%arg0: i32, %arg1: i32) -> (i32, i32) {
    %c0_i32 = arith.constant 0 : i32
    %c0_i32_0 = arith.constant 0 : i32
    %c0_i32_1 = arith.constant 0 : i32
    return %c0_i32, %c0_i32_0 : i32, i32
  }
  func.func @transform_19(%arg0: i32, %arg1: i32) -> (i32, i32) {
    %c0_i32 = arith.constant 0 : i32
    %c0_i32_0 = arith.constant 0 : i32
    %c0_i32_1 = arith.constant 0 : i32
    return %c0_i32, %c0_i32_0 : i32, i32
  }
  func.func @transform_20(%arg0: i32, %arg1: i32) -> (i32, i32) {
    %c0_i32 = arith.constant 0 : i32
    %c0_i32_0 = arith.constant 0 : i32
    %c0_i32_1 = arith.constant 0 : i32
    return %c0_i32, %c0_i32_0 : i32, i32
  }
  func.func @transform_21(%arg0: i32, %arg1: i32) -> (i32, i32, i32) {
    %c0_i32 = arith.constant 0 : i32
    %c0_i32_0 = arith.constant 0 : i32
    return %arg0, %c0_i32, %arg1 : i32, i32, i32
  }
}

</mosaic_0001>

<bundles_post_ra>
// kernel: tpu_custom_call.1
= control target key start
LH: loop header
LB: loop body
LE: loop exit
PB: predicated region body
PF: predicated region fallthrough
CT: control target
= control target key end

     0   :  { %s3975_s25 = smov 0   ;;  %s3977_s26 = smov 0   ;;  %s5243_s0 = inlined_call_operand.vmem [shape: bf16[2,131,512], index: 0, kind: input, shape index: {}]   ;;  %s5244_s1 = inlined_call_operand.vmem [shape: bf16[64,131], index: 1, kind: input, shape index: {}]   ;;  %s5245_s2 = inlined_call_operand.vmem [shape: f32[64,1], index: 2, kind: input, shape index: {}]   ;;  %s5246_s3 = inlined_call_operand.vmem [shape: bf16[64,64], index: 3, kind: input, shape index: {}]   ;;  %s5247_s4 = inlined_call_operand.vmem [shape: f32[64,1], index: 4, kind: input, shape index: {}]   ;;  %s5248_s5 = inlined_call_operand.vmem [shape: bf16[3,64], index: 5, kind: input, shape index: {}]   ;;  %s5249_s6 = inlined_call_operand.vmem [shape: f32[3,1], index: 6, kind: input, shape index: {}]   ;;  %s5250_s7 = inlined_call_operand.vmem [shape: bf16[64,3], index: 7, kind: input, shape index: {}]   ;;  %s5251_s8 = inlined_call_operand.vmem [shape: bf16[64,131], index: 8, kind: input, shape index: {}]   ;;  %s5252_s9 = inlined_call_operand.vmem [shape: f32[64,1], index: 9, kind: input, shape index: {}]   ;;  %s5253_s10 = inlined_call_operand.vmem [shape: bf16[64,64], index: 10, kind: input, shape index: {}]   ;;  %s5254_s11 = inlined_call_operand.vmem [shape: f32[64,1], index: 11, kind: input, shape index: {}]   ;;  %s5255_s12 = inlined_call_operand.vmem [shape: bf16[3,64], index: 12, kind: input, shape index: {}]   ;;  %s5256_s13 = inlined_call_operand.vmem [shape: f32[3,1], index: 13, kind: input, shape index: {}]   ;;  %s5257_s14 = inlined_call_operand.vmem [shape: bf16[64,3], index: 14, kind: input, shape index: {}]   ;;  %s5258_s15 = inlined_call_operand.vmem [shape: bf16[64,131], index: 15, kind: input, shape index: {}]   ;;  %s5259_s16 = inlined_call_operand.vmem [shape: f32[64,1], index: 16, kind: input, shape index: {}]   ;;  %s5260_s17 = inlined_call_operand.vmem [shape: bf16[64,64], index: 17, kind: input, shape index: {}]   ;;  %s5261_s18 = inlined_call_operand.vmem [shape: f32[64,1], index: 18, kind: input, shape index: {}]   ;;  %s5262_s19 = inlined_call_operand.vmem [shape: bf16[3,64], index: 19, kind: input, shape index: {}]   ;;  %s5263_s20 = inlined_call_operand.vmem [shape: f32[3,1], index: 20, kind: input, shape index: {}]   ;;  %s5264_s21 = inlined_call_operand.vmem [shape: f32[2,3,512], index: 21, kind: output, shape index: {}]  }
   0x1   :  { %5320 = sst [smem:[#allocation44_spill]] %s5243_s0 }
   0x2   :  { %5321 = sst [smem:[#allocation45_spill]] %s5244_s1 }
   0x3   :  { %5322 = sst [smem:[#allocation46_spill]] %s5245_s2  ;;  %s3973_s2 = smov 0  }
   0x4   :  { %5323 = sst [smem:[#allocation47_spill]] %s5246_s3 }
   0x5   :  { %5324 = sst [smem:[#allocation48_spill]] %s5247_s4 }
   0x6   :  { %5325 = sst [smem:[#allocation49_spill]] %s5248_s5 }
   0x7 LB: > { %5326 = sst [smem:[#allocation2_spill]] %s3855_s25  ;;  %s43_s27 = sadd.s32 1, %s3855_s25  ;;  %s3859_s26 = sphi %s3977_s26, %s31_s26   ;;  %s3855_s25 = sphi %s3975_s25, %s5422_s25   ;;  %s3851_s2 = sphi %s3973_s2, %s5421_s2  }
   0x8   : > { %p3516_p0 = scmp.ge.s32.totalorder %s3859_s26, 1  ;;  %p45_p1 = scmp.ge.s32.totalorder %s43_s27, 2 }
   0x9   : > { %p608_p2 = scmp.lt.s32.totalorder %s3859_s26, 3 }
   0xa   : > { %s5424_s27 = smov (%p45_p1, %s43_s27), 0 }
   0xb   : > { %5327 = sst [smem:[#allocation3_spill]] %s5424_s27  ;;  %p609_p3 = pnand %p3516_p0, %p608_p2 }
   0xd   : > { %612 = sbr.rel (%p609_p3) target bundleno = 2225 (0x8b1), region = 104 }
  0x12   : > { %p677_p4 = scmp.lt.s32.totalorder %s3851_s2, 1  ;;  %s5328_s29 = sld [smem:[#allocation46_spill]]  ;;  %v5271_v1 = vmov 0   ;;  %vm997_vm0 = vcmask 23552   ;;  %vm1010_vm1 = vcmask 1040384   ;;  %vm1011_vm2 = vcmask 1041408  }
  0x13   : > { %3700 = vset.pattern.permute.xlu0 %v5271_v1  ;;  %3701 = vset.pattern.permute.xlu1 %v5271_v1  ;;  %s5329_s30 = sld [smem:[#allocation45_spill]]  ;;  %v3862_v47 = vmov 65535   ;;  %v1504_v62 = vld [vmem:[%s5249_s6] sm:$0x7]  ;;  %vm1296_vm3 = vcmask 523264  }
  0x14   : > { %s5426_s2 = smov (!%p677_p4, %s3851_s2), 1  ;;  %s5330_s27 = sld [smem:[#allocation44_spill]]  ;;  %v1012_v48 = vsel %vm1010_vm1, 4294967295, %v3862_v47  ;;  %v3050_v47 = vld [vmem:[%s5261_s18 + $0x8] sm:$0xff] }
  0x15   : > { %s3673_s24 = smul.u32 272, %s5426_s2  ;;  %s5331_s5 = sld [smem:[#allocation48_spill]]  ;;  %v4093_v56 = vsel %vm1011_vm2, %v1012_v48, 0 }
  0x16   : > { %5334 = vst [vmem:[#allocation6_spill] sm:$0xff] %v4093_v56  ;;  %s5341_s1 = sld [smem:[#allocation47_spill]] }
  0x17   : > { %s5343_s23 = sld [smem:[#allocation49_spill]] }
  0x18   : > { %v749_v0 = vld [vmem:[%s5328_s29 + $0x30] sm:$0xff]  ;;  %v750_v3 = vld [vmem:[%s5328_s29 + $0x38] sm:$0xff]  ;;  %v747_v4 = vld [vmem:[%s5328_s29 + $0x20] sm:$0xff] }
  0x19   : > { %783 = vperm.xlu0 %3700, %v749_v0   ;;  %v3754_v2 = vld [vmem:[%s5329_s30 + $0x4] ss:$8 sps:$4 sm:$0xff]   ;;  %773 = vperm.xlu1 %3701, %v747_v4   ;;  %v745_v5 = vld [vmem:[%s5328_s29 + $0x10] sm:$0xff]  ;;  %v746_v9 = vld [vmem:[%s5328_s29 + $0x18] sm:$0xff] }
  0x1a   : > { %3564 = vmatprep.mubr.msk.bf16.mxu0 %vm997_vm0, %v3754_v2  ;;  %3568 = vmatprep.mubr.msk.bf16.mxu1 %vm997_vm0, %v3754_v2  ;;  %s4013_s25 = scalar_lea.vmem %s5330_s27, %s3673_s24  ;;  %v748_v6 = vld [vmem:[%s5328_s29 + $0x28] sm:$0xff]  ;;  %v743_v12 = vld [vmem:[%s5328_s29] sm:$0xff] }
  0x1b   : > { %v3702_v7 = vld [vmem:[%s4013_s25 + $0xe4] ss:$16 sps:$4 sm:$0xff]   ;;  %v3704_v8 = vld [vmem:[%s4013_s25 + $0xec] ss:$16 sps:$4 sm:$0xff]   ;;  %v3706_v10 = vld [vmem:[%s4013_s25 + $0xe0] ss:$16 sps:$4 sm:$0xff]  }
  0x1c   : > { %1026 = vmatprep.subr.bf16.mxu0 %v3702_v7  ;;  %v3707_v11 = vld [vmem:[%s4013_s25 + $0xe8] ss:$16 sps:$4 sm:$0xff]   ;;  %1099 = vmatprep.subr.bf16.mxu1 %v3704_v8  ;;  %v3708_v13 = vld [vmem:[%s4013_s25 + $0xc4] ss:$16 sps:$4 sm:$0xff]   ;;  %v3710_v14 = vld [vmem:[%s4013_s25 + $0xcc] ss:$16 sps:$4 sm:$0xff]  }
  0x1d   : > { %788 = vperm.xlu0 %3700, %v750_v3   ;;  %778 = vperm.xlu1 %3701, %v748_v6   ;;  %v3712_v15 = vld [vmem:[%s4013_s25 + $0xc0] ss:$16 sps:$4 sm:$0xff]   ;;  %v3713_v16 = vld [vmem:[%s4013_s25 + $0xc8] ss:$16 sps:$4 sm:$0xff]   ;;  %v3714_v18 = vld [vmem:[%s4013_s25 + $0xa4] ss:$16 sps:$4 sm:$0xff]  }
  0x1e   : > { %1027 = vmatpush1.bf16.msra.mxu0 %v3706_v10  ;;  %1100 = vmatpush1.bf16.msra.mxu1 %v3707_v11  ;;  %v744_v17 = vld [vmem:[%s5328_s29 + $0x8] sm:$0xff]  ;;  %v1234_v19 = vld [vmem:[%s5331_s5 + $0x30] sm:$0xff]  ;;  %v1232_v25 = vld [vmem:[%s5331_s5 + $0x20] sm:$0xff] }
  0x1f   : > { %1028 = vmatprep.subr.bf16.mxu0 %v3708_v13  ;;  %1101 = vmatprep.subr.bf16.mxu1 %v3710_v14  ;;  %v3716_v20 = vld [vmem:[%s4013_s25 + $0xac] ss:$16 sps:$4 sm:$0xff]   ;;  %v3718_v21 = vld [vmem:[%s4013_s25 + $0xa0] ss:$16 sps:$4 sm:$0xff]   ;;  %v3719_v22 = vld [vmem:[%s4013_s25 + $0xa8] ss:$16 sps:$4 sm:$0xff]  }
  0x20   : > { %v3720_v23 = vld [vmem:[%s4013_s25 + $0x84] ss:$16 sps:$4 sm:$0xff]   ;;  %v3722_v24 = vld [vmem:[%s4013_s25 + $0x8c] ss:$16 sps:$4 sm:$0xff]   ;;  %v3724_v26 = vld [vmem:[%s4013_s25 + $0x80] ss:$16 sps:$4 sm:$0xff]  }
  0x21   : > { %763 = vperm.xlu0 %3700, %v745_v5   ;;  %768 = vperm.xlu1 %3701, %v746_v9   ;;  %v3725_v27 = vld [vmem:[%s4013_s25 + $0x88] ss:$16 sps:$4 sm:$0xff]   ;;  %v3726_v28 = vld [vmem:[%s4013_s25 + $0x64] ss:$16 sps:$4 sm:$0xff]   ;;  %v3728_v29 = vld [vmem:[%s4013_s25 + $0x6c] ss:$16 sps:$4 sm:$0xff]  }
  0x22   : > { %1029 = vmatpush1.bf16.msra.mxu0 %v3712_v15  ;;  %1102 = vmatpush1.bf16.msra.mxu1 %v3713_v16  ;;  %v3730_v30 = vld [vmem:[%s4013_s25 + $0x60] ss:$16 sps:$4 sm:$0xff]   ;;  %v3731_v31 = vld [vmem:[%s4013_s25 + $0x68] ss:$16 sps:$4 sm:$0xff]   ;;  %v3732_v32 = vld [vmem:[%s4013_s25 + $0x44] ss:$16 sps:$4 sm:$0xff]  }
  0x23   : > { %1030 = vmatprep.subr.bf16.mxu0 %v3714_v18  ;;  %1103 = vmatprep.subr.bf16.mxu1 %v3716_v20  ;;  %v3734_v33 = vld [vmem:[%s4013_s25 + $0x4c] ss:$16 sps:$4 sm:$0xff]   ;;  %v3736_v34 = vld [vmem:[%s4013_s25 + $0x40] ss:$16 sps:$4 sm:$0xff]   ;;  %v3737_v35 = vld [vmem:[%s4013_s25 + $0x48] ss:$16 sps:$4 sm:$0xff]  }
  0x24   : > { %v3738_v36 = vld [vmem:[%s4013_s25 + $0x24] ss:$16 sps:$4 sm:$0xff]   ;;  %v3740_v37 = vld [vmem:[%s4013_s25 + $0x2c] ss:$16 sps:$4 sm:$0xff]   ;;  %v3742_v46 = vld [vmem:[%s4013_s25 + $0x20] ss:$16 sps:$4 sm:$0xff]  }
  0x25   : > { %753 = vperm.xlu0 %3700, %v743_v12   ;;  %758 = vperm.xlu1 %3701, %v744_v17   ;;  %v4063_v38 = vld [vmem:[%s4013_s25] sm:$0xff]  ;;  %v699_v39 = vld [vmem:[%s4013_s25 + $0x10] sm:$0xff]  ;;  %v4067_v40 = vld [vmem:[%s4013_s25 + $0x8] sm:$0xff] }
  0x26   : > { %1031 = vmatpush1.bf16.msra.mxu0 %v3718_v21  ;;  %1104 = vmatpush1.bf16.msra.mxu1 %v3719_v22  ;;  %v700_v41 = vld [vmem:[%s4013_s25 + $0x18] sm:$0xff]  ;;  %v729_v42 = vld [vmem:[%s4013_s25 + $0x100] sm:$0x33]  ;;  %v730_v43 = vld [vmem:[%s4013_s25 + $0x108] sm:$0x33]  ;;  %v4081_v50 = vcombine.high %v4063_v38, %v699_v39  ;;  %v4096_v57 = vcombine.low %v4063_v38, %v699_v39 }
  0x27   : > { %1032 = vmatprep.subr.bf16.mxu0 %v3720_v23  ;;  %1105 = vmatprep.subr.bf16.mxu1 %v3722_v24  ;;  %v1235_v44 = vld [vmem:[%s5331_s5 + $0x38] sm:$0xff]  ;;  %v1230_v45 = vld [vmem:[%s5331_s5 + $0x10] sm:$0xff]  ;;  %v1233_v51 = vld [vmem:[%s5331_s5 + $0x28] sm:$0xff]  ;;  %v4090_v53 = vcombine.high %v4067_v40, %v700_v41  ;;  %v3561_v54 = vcombine.high %v729_v42, %v729_v42  ;;  %v3563_v55 = vcombine.high %v730_v43, %v730_v43 }
  0x28   : > { %v3743_v49 = vld [vmem:[%s4013_s25 + $0x28] ss:$16 sps:$4 sm:$0xff]   ;;  %5332 = vst [vmem:[#allocation4_spill] sm:$0xff] %v4081_v50  ;;  %v1228_v52 = vld [vmem:[%s5331_s5] sm:$0xff]  ;;  %5335 = vst [vmem:[#allocation7_spill] sm:$0xff] %v4096_v57  ;;  %v4099_v58 = vcombine.low %v4067_v40, %v700_v41  ;;  %v3560_v59 = vcombine.low %v729_v42, %v729_v42  ;;  %v3562_v60 = vcombine.low %v730_v43, %v730_v43 }
  0x29   : > { %1268 = vperm.xlu0 %3700, %v1234_v19   ;;  %1273 = vperm.xlu1 %3701, %v1235_v44   ;;  %5333 = vst [vmem:[#allocation5_spill] sm:$0xff] %v4090_v53  ;;  %v1231_v61 = vld [vmem:[%s5331_s5 + $0x18] sm:$0xff]  ;;  %v4110_v63 = vand.u32 %v3561_v54, %v4093_v56  ;;  %v4113_v0 = vand.u32 %v3563_v55, %v4093_v56  ;;  %v1229_v4 = vld [vmem:[%s5331_s5 + $0x8] sm:$0xff]  ;;  %v2009_v8 = vld [vmem:[%s5252_s9 + $0x30] sm:$0xff] }
  0x2a   : > { %1033 = vmatpush1.bf16.msra.mxu0 %v3724_v26  ;;  %1106 = vmatpush1.bf16.msra.mxu1 %v3725_v27  ;;  %5336 = vst [vmem:[#allocation8_spill] sm:$0xff] %v4099_v58  ;;  %v4118_v2 = vand.u32 %v3560_v59, %v4093_v56  ;;  %v4121_v3 = vand.u32 %v3562_v60, %v4093_v56  ;;  %v2010_v5 = vld [vmem:[%s5252_s9 + $0x38] sm:$0xff]  ;;  %v3752_v6 = vld [vmem:[%s5329_s30] ss:$8 sps:$4 sm:$0xff]   ;;  %v3758_v13 = vld [vmem:[%s5329_s30 + $0x24] ss:$8 sps:$4 sm:$0xff]  }
  0x2b   : > { %1034 = vmatprep.subr.bf16.mxu0 %v3726_v28  ;;  %1107 = vmatprep.subr.bf16.mxu1 %v3728_v29  ;;  %5337 = vst [vmem:[#allocation9_spill] sm:$0xff] %v4110_v63  ;;  %5338 = vst [vmem:[#allocation10_spill] sm:$0xff] %v4113_v0  ;;  %v3755_v7 = vld [vmem:[%s5329_s30 + $0x14] ss:$8 sps:$4 sm:$0xff]   ;;  %v2008_v9 = vld [vmem:[%s5252_s9 + $0x28] sm:$0xff] }
  0x2c   : > { %5339 = vst [vmem:[#allocation11_spill] sm:$0xff] %v4118_v2  ;;  %5340 = vst [vmem:[#allocation12_spill] sm:$0xff] %v4121_v3  ;;  %v2007_v10 = vld [vmem:[%s5252_s9 + $0x20] sm:$0xff]  ;;  %v2006_v11 = vld [vmem:[%s5252_s9 + $0x18] sm:$0xff] }
  0x2d   : > { %1258 = vperm.xlu0 %3700, %v1232_v25   ;;  %1263 = vperm.xlu1 %3701, %v1233_v51   ;;  %v3757_v12 = vld [vmem:[%s5329_s30 + $0x10] ss:$8 sps:$4 sm:$0xff]   ;;  %v2004_v15 = vld [vmem:[%s5252_s9 + $0x8] sm:$0xff]  ;;  %v2003_v16 = vld [vmem:[%s5252_s9] sm:$0xff] }
  0x2e   : > { %1035 = vmatpush1.bf16.msra.mxu0 %v3730_v30  ;;  %1108 = vmatpush1.bf16.msra.mxu1 %v3731_v31  ;;  %v2005_v14 = vld [vmem:[%s5252_s9 + $0x10] sm:$0xff]  ;;  %v2146_v17 = vld [vmem:[%s5254_s11 + $0x38] sm:$0xff]  ;;  %v3760_v18 = vld [vmem:[%s5329_s30 + $0x20] ss:$8 sps:$4 sm:$0xff]  }
  0x2f   : > { %1036 = vmatprep.subr.bf16.mxu0 %v3732_v32  ;;  %1109 = vmatprep.subr.bf16.mxu1 %v3734_v33  ;;  %v3761_v19 = vld [vmem:[%s5329_s30 + $0x34] ss:$8 sps:$4 sm:$0xff]   ;;  %v2144_v21 = vld [vmem:[%s5254_s11 + $0x28] sm:$0xff]  ;;  %v2143_v22 = vld [vmem:[%s5254_s11 + $0x20] sm:$0xff] }
  0x30   : > { %v2145_v20 = vld [vmem:[%s5254_s11 + $0x30] sm:$0xff]  ;;  %v2142_v23 = vld [vmem:[%s5254_s11 + $0x18] sm:$0xff]  ;;  %v2140_v26 = vld [vmem:[%s5254_s11 + $0x8] sm:$0xff] }
  0x31   : > { %1248 = vperm.xlu0 %3700, %v1230_v45   ;;  %1253 = vperm.xlu1 %3701, %v1231_v61   ;;  %v3763_v24 = vld [vmem:[%s5329_s30 + $0x30] ss:$8 sps:$4 sm:$0xff]   ;;  %v2139_v27 = vld [vmem:[%s5254_s11] sm:$0xff]  ;;  %v2918_v33 = vld [vmem:[%s5259_s16 + $0x28] sm:$0xff] }
  0x32   : > { %1037 = vmatpush1.bf16.msra.mxu0 %v3736_v34  ;;  %1110 = vmatpush1.bf16.msra.mxu1 %v3737_v35  ;;  %v2141_v25 = vld [vmem:[%s5254_s11 + $0x10] sm:$0xff]  ;;  %v2414_v29 = vld [vmem:[%s5256_s13] sm:$0x7]  ;;  %v2920_v31 = vld [vmem:[%s5259_s16 + $0x38] sm:$0xff] }
  0x33   : > { %1038 = vmatprep.subr.bf16.mxu0 %v3738_v36  ;;  %1111 = vmatprep.subr.bf16.mxu1 %v3740_v37  ;;  %v2919_v28 = vld [vmem:[%s5259_s16 + $0x30] sm:$0xff]  ;;  %v2917_v30 = vld [vmem:[%s5259_s16 + $0x20] sm:$0xff]  ;;  %v2916_v35 = vld [vmem:[%s5259_s16 + $0x18] sm:$0xff] }
  0x34   : > { %v2915_v32 = vld [vmem:[%s5259_s16 + $0x10] sm:$0xff]  ;;  %v2913_v34 = vld [vmem:[%s5259_s16] sm:$0xff]  ;;  %v2914_v37 = vld [vmem:[%s5259_s16 + $0x8] sm:$0xff] }
  0x35   : > { %1238 = vperm.xlu0 %3700, %v1228_v52   ;;  %1243 = vperm.xlu1 %3701, %v1229_v4   ;;  %v3055_v36 = vld [vmem:[%s5261_s18 + $0x30] sm:$0xff]  ;;  %v3053_v39 = vld [vmem:[%s5261_s18 + $0x20] sm:$0xff]  ;;  %v3056_v41 = vld [vmem:[%s5261_s18 + $0x38] sm:$0xff] }
  0x36   : > { %1039 = vmatpush1.bf16.msra.mxu0 %v3742_v46  ;;  %1112 = vmatpush1.bf16.msra.mxu1 %v3743_v49  ;;  %v3051_v42 = vld [vmem:[%s5261_s18 + $0x10] sm:$0xff]  ;;  %v3054_v43 = vld [vmem:[%s5261_s18 + $0x28] sm:$0xff]  ;;  %v3049_v44 = vld [vmem:[%s5261_s18] sm:$0xff] }
  0x37   : > { %1040 = vmatprep.subr.bf16.mxu0 %v4081_v50  ;;  %1113 = vmatprep.subr.bf16.mxu1 %v4090_v53  ;;  %v3052_v45 = vld [vmem:[%s5261_s18 + $0x18] sm:$0xff]  ;;  %v3324_v46 = vld [vmem:[%s5263_s20] sm:$0x7] }
  0x39   : > { %1507 = vperm.xlu0 %3700, %v1504_v62   ;;  %2043 = vperm.xlu1 %3701, %v2009_v8  }
  0x3a   : > { %1041 = vmatpush1.bf16.msra.mxu0 %v4096_v57  ;;  %1114 = vmatpush1.bf16.msra.mxu1 %v4099_v58 }
  0x3b   : > { %1056 = vmatprep.subr.bf16.mxu0 %v4110_v63  ;;  %1129 = vmatprep.subr.bf16.mxu1 %v4113_v0 }
  0x3d   : > { %2048 = vperm.xlu0 %3700, %v2010_v5   ;;  %2033 = vperm.xlu1 %3701, %v2007_v10  }
  0x3e   : > { %1057 = vmatpush2.bf16.msra.mxu0 %v4118_v2  ;;  %1130 = vmatpush2.bf16.msra.mxu1 %v4121_v3 }
  0x41   : > { %1059 = vmatmul.mubr.bf16.vlgmr.msra.gmra.mxu0 %v3752_v6  ;;  %1132 = vmatmul.mubr.bf16.vlgmr.msra.gmra.mxu1 %v3752_v6 }
  0x42   : > { %3565 = vmatprep.mubr.msk.bf16.mxu0 %vm997_vm0, %v3755_v7  ;;  %3569 = vmatprep.mubr.msk.bf16.mxu1 %vm997_vm0, %v3755_v7 }
  0x43   : > { %2038 = vperm.xlu0 %3700, %v2008_v9   ;;  %2023 = vperm.xlu1 %3701, %v2005_v14  }
  0x47   : > { %2028 = vperm.xlu0 %3700, %v2006_v11   ;;  %2013 = vperm.xlu1 %3701, %v2003_v16  }
  0x49   : > { %1069 = vmatmul.mubr.bf16.gmra.mxu0 %v3757_v12  ;;  %1142 = vmatmul.mubr.bf16.gmra.mxu1 %v3757_v12 }
  0x4a   : > { %3566 = vmatprep.mubr.msk.bf16.mxu0 %vm997_vm0, %v3758_v13  ;;  %3570 = vmatprep.mubr.msk.bf16.mxu1 %vm997_vm0, %v3758_v13 }
  0x4b   : > { %2018 = vperm.xlu0 %3700, %v2004_v15   ;;  %2179 = vperm.xlu1 %3701, %v2145_v20  }
  0x4f   : > { %2184 = vperm.xlu0 %3700, %v2146_v17   ;;  %2169 = vperm.xlu1 %3701, %v2143_v22  }
  0x51   : > { %1079 = vmatmul.mubr.bf16.gmra.mxu0 %v3760_v18  ;;  %1152 = vmatmul.mubr.bf16.gmra.mxu1 %v3760_v18 }
  0x52   : > { %3567 = vmatprep.mubr.msk.bf16.mxu0 %vm997_vm0, %v3761_v19  ;;  %3571 = vmatprep.mubr.msk.bf16.mxu1 %vm997_vm0, %v3761_v19 }
  0x53   : > { %2174 = vperm.xlu0 %3700, %v2144_v21   ;;  %2159 = vperm.xlu1 %3701, %v2141_v25  }
  0x57   : > { %2164 = vperm.xlu0 %3700, %v2142_v23   ;;  %2149 = vperm.xlu1 %3701, %v2139_v27  }
  0x59   : > { %1089 = vmatmul.mubr.bf16.gmra.mxu0 %v3763_v24  ;;  %1162 = vmatmul.mubr.bf16.gmra.mxu1 %v3763_v24 }
  0x5a   : > { %1341 = vmatprep.mubr.bf16.mxu0 %v5271_v1  ;;  %1414 = vmatprep.mubr.bf16.mxu1 %v5271_v1 }
  0x5b   : > { %2154 = vperm.xlu0 %3700, %v2140_v26   ;;  %2417 = vperm.xlu1 %3701, %v2414_v29  }
  0x5f   : > { %2953 = vperm.xlu0 %3700, %v2919_v28   ;;  %2958 = vperm.xlu1 %3701, %v2920_v31  }
  0x63   : > { %2943 = vperm.xlu0 %3700, %v2917_v30   ;;  %2948 = vperm.xlu1 %3701, %v2918_v33  }
  0x67   : > { %2933 = vperm.xlu0 %3700, %v2915_v32   ;;  %2938 = vperm.xlu1 %3701, %v2916_v35  }
  0x6b   : > { %2923 = vperm.xlu0 %3700, %v2913_v34   ;;  %2928 = vperm.xlu1 %3701, %v2914_v37  }
  0x6f   : > { %3089 = vperm.xlu0 %3700, %v3055_v36   ;;  %3094 = vperm.xlu1 %3701, %v3056_v41  }
  0x73   : > { %3079 = vperm.xlu0 %3700, %v3053_v39   ;;  %3084 = vperm.xlu1 %3701, %v3054_v43  }
  0x77   : > { %3069 = vperm.xlu0 %3700, %v3051_v42   ;;  %3074 = vperm.xlu1 %3701, %v3052_v45  }
  0x7b   : > { %3059 = vperm.xlu0 %3700, %v3049_v44   ;;  %3064 = vperm.xlu1 %3701, %v3050_v47  }
  0x7f   : > { %3327 = vperm.xlu0 %3700, %v3324_v46  }
  0x94   : > { %v784_v61 = vpop.permute.xlu0 %783  ;;  %v4269_v62 = vpop.permute.xlu1 %773 }
  0x98   : > { %v789_v10 = vpop.permute.xlu0 %788  ;;  %v779_v11 = vpop.permute.xlu1 %778 }
  0x9c   : > { %v4275_v18 = vpop.permute.xlu0 %763  ;;  %v769_v19 = vpop.permute.xlu1 %768 }
  0xa0   : > { %v4277_v26 = vpop.permute.xlu0 %753  ;;  %v4279_v27 = vpop.permute.xlu1 %758 }
 0x101   : > { %v4261_v48 = vpop.f32.mrf.mxu0  ;;  %v4263_v49 = vpop.f32.mrf.mxu1 }
 0x103   : > { %v1062_v51 = vpop.f32.mrf.mxu0  ;;  %v1135_v52 = vpop.f32.mrf.mxu1 }
 0x104   : > { %v4282_v28 = vadd.f32 %v1062_v51, %v4277_v26  ;;  %v4285_v29 = vadd.f32 %v1135_v52, %v4277_v26 }
 0x105   : > { %v4265_v54 = vpop.f32.mrf.mxu0  ;;  %v4267_v55 = vpop.f32.mrf.mxu1 }
 0x107   : > { %v1066_v59 = vpop.f32.mrf.mxu0  ;;  %v1139_v60 = vpop.f32.mrf.mxu1 }
 0x108   : > { %v4288_v30 = vadd.f32 %v1066_v59, %v4279_v27  ;;  %v4291_v31 = vadd.f32 %v1139_v60, %v4279_v27 }
 0x109   : > { %v4271_v4 = vpop.f32.mrf.mxu0  ;;  %v4273_v5 = vpop.f32.mrf.mxu1 }
 0x10b   : > { %v1072_v6 = vpop.f32.mrf.mxu0  ;;  %v1145_v7 = vpop.f32.mrf.mxu1 }
 0x10c   : > { %v4294_v34 = vadd.f32 %v1072_v6, %v4275_v18  ;;  %v4297_v35 = vadd.f32 %v1145_v7, %v4275_v18 }
 0x10d   : > { %v1074_v8 = vpop.f32.mrf.mxu0  ;;  %v1147_v9 = vpop.f32.mrf.mxu1 }
 0x10e   : > { %v4299_v36 = vadd.f32 %v1074_v8, %v769_v19  ;;  %v4301_v37 = vadd.f32 %v1147_v9, %v769_v19 }
 0x10f   : > { %v1076_v12 = vpop.f32.mrf.mxu0  ;;  %v1149_v13 = vpop.f32.mrf.mxu1 }
 0x110   : > { %v4303_v39 = vadd.f32 %v1076_v12, %v769_v19  ;;  %v4305_v41 = vadd.f32 %v1149_v13, %v769_v19 }
 0x111   : > { %v1080_v14 = vpop.f32.mrf.mxu0  ;;  %v1153_v15 = vpop.f32.mrf.mxu1 }
 0x113   : > { %v1082_v16 = vpop.f32.mrf.mxu0  ;;  %v1155_v17 = vpop.f32.mrf.mxu1 }
 0x114   : > { %v1083_v59 = vadd.f32 %v1082_v16, %v4269_v62  ;;  %v1156_v60 = vadd.f32 %v1155_v17, %v4269_v62  ;;  %v1081_v16 = vadd.f32 %v1080_v14, %v4269_v62  ;;  %v1154_v17 = vadd.f32 %v1153_v15, %v4269_v62 }
 0x115   : > { %v1084_v20 = vpop.f32.mrf.mxu0  ;;  %v1157_v21 = vpop.f32.mrf.mxu1  ;;  %v1071_v62 = vadd.f32 %v4271_v4, %v4275_v18  ;;  %v1144_v15 = vadd.f32 %v4273_v5, %v4275_v18  ;;  %v1184_v4 = vmax.f32 %v4299_v36, 0.0  ;;  %v1186_v5 = vmax.f32 %v4301_v37, 0.0 }
 0x116   : > { %v1085_v12 = vadd.f32 %v1084_v20, %v779_v11  ;;  %v1158_v1 = vadd.f32 %v1157_v21, %v779_v11  ;;  %v1191_v0 = vmax.f32 %v1156_v60, 0.0  ;;  %v1179_v60 = vmax.f32 %v4291_v31, 0.0 }
 0x117   : > { %v1086_v22 = vpop.f32.mrf.mxu0  ;;  %v1159_v23 = vpop.f32.mrf.mxu1  ;;  %v1173_v36 = vmax.f32 %v4282_v28, 0.0  ;;  %v1175_v37 = vmax.f32 %v4285_v29, 0.0  ;;  %v3764_v28 = vld [vmem:[%s5341_s1] sm:$0xff]   ;;  %v5342_v29 = vmov 0  }
 0x118   : > { %v1087_v42 = vadd.f32 %v1086_v22, %v779_v11  ;;  %v1160_v43 = vadd.f32 %v1159_v23, %v779_v11  ;;  %v1192_v21 = vmax.f32 %v1085_v12, 0.0 }
 0x119   : > { %v1090_v24 = vpop.f32.mrf.mxu0  ;;  %v1163_v25 = vpop.f32.mrf.mxu1  ;;  %v1207_v12 = vpack.c.bf16 %v1179_v60, %v1175_v37 }
 0x11a   : > { %v1091_v6 = vadd.f32 %v1090_v24, %v784_v61  ;;  %v1164_v7 = vadd.f32 %v1163_v25, %v784_v61  ;;  %v1193_v22 = vmax.f32 %v1087_v42, 0.0  ;;  %v1195_v23 = vmax.f32 %v1160_v43, 0.0 }
 0x11b   : > { %v1092_v32 = vpop.f32.mrf.mxu0  ;;  %v1165_v33 = vpop.f32.mrf.mxu1  ;;  %v1189_v25 = vmax.f32 %v1083_v59, 0.0  ;;  %v1190_v59 = vmax.f32 %v1154_v17, 0.0 }
 0x11c   : > { %v1093_v46 = vadd.f32 %v1092_v32, %v784_v61  ;;  %v1166_v47 = vadd.f32 %v1165_v33, %v784_v61  ;;  %v1196_v24 = vmax.f32 %v1091_v6, 0.0  ;;  %v1198_v61 = vmax.f32 %v1164_v7, 0.0 }
 0x11d   : > { %v1094_v44 = vpop.f32.mrf.mxu0  ;;  %v1167_v45 = vpop.f32.mrf.mxu1  ;;  %v1215_v14 = vpack.c.bf16 %v1195_v23, %v1191_v0  ;;  %v1183_v0 = vmax.f32 %v4297_v35, 0.0  ;;  %v1182_v35 = vmax.f32 %v1144_v15, 0.0  ;;  %v3767_v23 = vld [vmem:[%s5341_s1 + $0x18] sm:$0xff]  }
 0x11e   : > { %v1095_v51 = vadd.f32 %v1094_v44, %v789_v10  ;;  %v1168_v52 = vadd.f32 %v1167_v45, %v789_v10  ;;  %v1197_v32 = vmax.f32 %v1093_v46, 0.0  ;;  %v1199_v33 = vmax.f32 %v1166_v47, 0.0 }
 0x11f   : > { %v1096_v8 = vpop.f32.mrf.mxu0  ;;  %v1169_v9 = vpop.f32.mrf.mxu1  ;;  %v1187_v46 = vmax.f32 %v4305_v41, 0.0  ;;  %v1213_v47 = vpack.c.bf16 %v1193_v22, %v1189_v25  ;;  %v1177_v41 = vmax.f32 %v4288_v30, 0.0  ;;  %v3766_v22 = vld [vmem:[%s5341_s1 + $0x10] sm:$0xff]  }
 0x120   : > { %v1097_v13 = vadd.f32 %v1096_v8, %v789_v10  ;;  %v1170_v19 = vadd.f32 %v1169_v9, %v789_v10  ;;  %v1200_v3 = vmax.f32 %v1095_v51, 0.0  ;;  %v1202_v2 = vmax.f32 %v1168_v52, 0.0  ;;  %v1269_v25 = vpop.permute.xlu0 %1268 }
 0x121   : > { %v1194_v10 = vmax.f32 %v1158_v1, 0.0  ;;  %v1185_v51 = vmax.f32 %v4303_v39, 0.0  ;;  %v1188_v52 = vmax.f32 %v1081_v16, 0.0  ;;  %v1065_v1 = vadd.f32 %v4265_v54, %v4279_v27 }
 0x122   : > { %v1201_v44 = vmax.f32 %v1097_v13, 0.0  ;;  %v1203_v45 = vmax.f32 %v1170_v19, 0.0  ;;  %v1216_v42 = vpack.c.bf16 %v1200_v3, %v1196_v24  ;;  %v1218_v43 = vpack.c.bf16 %v1202_v2, %v1198_v61  ;;  %v3765_v19 = vld [vmem:[%s5341_s1 + $0x8] sm:$0xff]  }
 0x123   : > { %v1138_v2 = vadd.f32 %v4267_v55, %v4279_v27  ;;  %v1181_v3 = vmax.f32 %v4294_v34, 0.0  ;;  %v1212_v18 = vpack.c.bf16 %v1192_v21, %v1188_v52  ;;  %v1214_v39 = vpack.c.bf16 %v1194_v10, %v1190_v59 }
 0x124   : > { %v1217_v20 = vpack.c.bf16 %v1201_v44, %v1197_v32  ;;  %v1219_v11 = vpack.c.bf16 %v1203_v45, %v1199_v33  ;;  %v1211_v6 = vpack.c.bf16 %v1187_v46, %v1183_v0  ;;  %v1061_v55 = vadd.f32 %v4261_v48, %v4277_v26  ;;  %v1259_v46 = vpop.permute.xlu0 %1258 }
 0x125   : > { %v1209_v54 = vpack.c.bf16 %v1185_v51, %v1181_v3  ;;  %v1134_v27 = vadd.f32 %v4263_v49, %v4277_v26  ;;  %v1180_v34 = vmax.f32 %v1071_v62, 0.0  ;;  %v1176_v30 = vmax.f32 %v1065_v1, 0.0 }
 0x126   : > { %1317 = vmatprep.subr.bf16.mxu0 %v1217_v20  ;;  %1390 = vmatprep.subr.bf16.mxu1 %v1219_v11  ;;  %v1178_v31 = vmax.f32 %v1138_v2, 0.0  ;;  %v1210_v8 = vpack.c.bf16 %v1186_v5, %v1182_v35  ;;  %v1205_v9 = vpack.c.bf16 %v1177_v41, %v1173_v36  ;;  %v1172_v48 = vmax.f32 %v1061_v55, 0.0  ;;  %v1274_v20 = vpop.permute.xlu1 %1273 }
 0x127   : > { %1318 = vmatpush1.bf16.msra.mxu0 %v1216_v42  ;;  %1391 = vmatpush1.bf16.msra.mxu1 %v1218_v43  ;;  %v1208_v7 = vpack.c.bf16 %v1184_v4, %v1180_v34  ;;  %v1174_v13 = vmax.f32 %v1134_v27, 0.0 }
 0x128   : > { %1319 = vmatprep.subr.bf16.mxu0 %v1213_v47  ;;  %1392 = vmatprep.subr.bf16.mxu1 %v1215_v14  ;;  %v1204_v49 = vpack.c.bf16 %v1176_v30, %v1172_v48  ;;  %v4373_v2 = vpop.permute.xlu0 %1248 }
 0x129   : > { %v1206_v26 = vpack.c.bf16 %v1178_v31, %v1174_v13 }
 0x12a   : > { %v1264_v47 = vpop.permute.xlu1 %1263 }
 0x12b   : > { %1320 = vmatpush1.bf16.msra.mxu0 %v1212_v18  ;;  %1393 = vmatpush1.bf16.msra.mxu1 %v1214_v39 }
 0x12c   : > { %1321 = vmatprep.subr.bf16.mxu0 %v1209_v54  ;;  %1394 = vmatprep.subr.bf16.mxu1 %v1211_v6  ;;  %v4375_v60 = vpop.permute.xlu0 %1238 }
 0x12e   : > { %v1254_v3 = vpop.permute.xlu1 %1253 }
 0x12f   : > { %1322 = vmatpush1.bf16.msra.mxu0 %v1208_v7  ;;  %1395 = vmatpush1.bf16.msra.mxu1 %v1210_v8 }
 0x130   : > { %1323 = vmatprep.subr.bf16.mxu0 %v1205_v9  ;;  %1396 = vmatprep.subr.bf16.mxu1 %v1207_v12 }
 0x132   : > { %v4377_v54 = vpop.permute.xlu1 %1243 }
 0x133   : > { %1324 = vmatpush1.bf16.msra.mxu0 %v1204_v49  ;;  %1397 = vmatpush1.bf16.msra.mxu1 %v1206_v26 }
 0x136   : > { %3576 = vmatmul.mubr.msk.bf16.vlgmr.msra.gmra.mxu0 %vm1296_vm3, %v3764_v28  ;;  %3580 = vmatmul.mubr.msk.bf16.vlgmr.msra.gmra.mxu1 %vm1296_vm3, %v3764_v28 }
 0x137   : > { %1351 = vmatprep.mubr.bf16.mxu0 %v5342_v29  ;;  %1424 = vmatprep.mubr.bf16.mxu1 %v5342_v29 }
 0x13e   : > { %3577 = vmatmul.mubr.msk.bf16.gmra.mxu0 %vm1296_vm3, %v3765_v19  ;;  %3581 = vmatmul.mubr.msk.bf16.gmra.mxu1 %vm1296_vm3, %v3765_v19 }
 0x13f   : > { %1361 = vmatprep.mubr.bf16.mxu0 %v5342_v29  ;;  %1434 = vmatprep.mubr.bf16.mxu1 %v5342_v29 }
 0x146   : > { %3578 = vmatmul.mubr.msk.bf16.gmra.mxu0 %vm1296_vm3, %v3766_v22  ;;  %3582 = vmatmul.mubr.msk.bf16.gmra.mxu1 %vm1296_vm3, %v3766_v22 }
 0x147   : > { %1371 = vmatprep.mubr.bf16.mxu0 %v5342_v29  ;;  %1444 = vmatprep.mubr.bf16.mxu1 %v5342_v29 }
 0x14e   : > { %3579 = vmatmul.mubr.msk.bf16.gmra.mxu0 %vm1296_vm3, %v3767_v23  ;;  %3583 = vmatmul.mubr.msk.bf16.gmra.mxu1 %vm1296_vm3, %v3767_v23 }
 0x14f   : > { %1545 = vmatprep.mubr.bf16.mxu0 %v5342_v29  ;;  %1586 = vmatprep.mubr.bf16.mxu1 %v5342_v29 }
 0x1f6   : > { %v4361_v32 = vpop.f32.mrf.mxu0  ;;  %v4363_v33 = vpop.f32.mrf.mxu1 }
 0x1f8   : > { %v1345_v44 = vpop.f32.mrf.mxu0  ;;  %v1418_v45 = vpop.f32.mrf.mxu1 }
 0x1f9   : > { %v4380_v6 = vadd.f32 %v1345_v44, %v4375_v60  ;;  %v4383_v55 = vadd.f32 %v1418_v45, %v4375_v60 }
 0x1fa   : > { %v4365_v16 = vpop.f32.mrf.mxu0  ;;  %v4367_v17 = vpop.f32.mrf.mxu1 }
 0x1fc   : > { %v1349_v24 = vpop.f32.mrf.mxu0  ;;  %v1422_v61 = vpop.f32.mrf.mxu1 }
 0x1fd   : > { %v4386_v27 = vadd.f32 %v1349_v24, %v4377_v54  ;;  %v4389_v34 = vadd.f32 %v1422_v61, %v4377_v54 }
 0x1fe   : > { %v4369_v11 = vpop.f32.mrf.mxu0  ;;  %v4371_v21 = vpop.f32.mrf.mxu1 }
 0x200   : > { %v1355_v10 = vpop.f32.mrf.mxu0  ;;  %v1428_v42 = vpop.f32.mrf.mxu1 }
 0x201   : > { %v4392_v37 = vadd.f32 %v1355_v10, %v4373_v2  ;;  %v4395_v30 = vadd.f32 %v1428_v42, %v4373_v2 }
 0x202   : > { %v1357_v43 = vpop.f32.mrf.mxu0  ;;  %v1430_v51 = vpop.f32.mrf.mxu1 }
 0x203   : > { %v4397_v31 = vadd.f32 %v1357_v43, %v1254_v3  ;;  %v4399_v7 = vadd.f32 %v1430_v51, %v1254_v3 }
 0x204   : > { %v1359_v14 = vpop.f32.mrf.mxu0  ;;  %v1432_v62 = vpop.f32.mrf.mxu1 }
 0x205   : > { %v4401_v8 = vadd.f32 %v1359_v14, %v1254_v3  ;;  %v4403_v9 = vadd.f32 %v1432_v62, %v1254_v3 }
 0x206   : > { %v1363_v15 = vpop.f32.mrf.mxu0  ;;  %v1436_v52 = vpop.f32.mrf.mxu1 }
 0x208   : > { %v1365_v59 = vpop.f32.mrf.mxu0  ;;  %v1438_v1 = vpop.f32.mrf.mxu1 }
 0x209   : > { %v1366_v23 = vadd.f32 %v1365_v59, %v1259_v46  ;;  %v1439_v44 = vadd.f32 %v1438_v1, %v1259_v46 }
 0x20a   : > { %v1367_v0 = vpop.f32.mrf.mxu0  ;;  %v1440_v4 = vpop.f32.mrf.mxu1 }
 0x20b   : > { %v1368_v42 = vadd.f32 %v1367_v0, %v1264_v47  ;;  %v1441_v43 = vadd.f32 %v1440_v4, %v1264_v47 }
 0x20c   : > { %v1369_v5 = vpop.f32.mrf.mxu0  ;;  %v1442_v18 = vpop.f32.mrf.mxu1 }
 0x20d   : > { %v1370_v12 = vadd.f32 %v1369_v5, %v1264_v47  ;;  %v1443_v48 = vadd.f32 %v1442_v18, %v1264_v47  ;;  %v1475_v0 = vmax.f32 %v1368_v42, 0.0  ;;  %v1477_v47 = vmax.f32 %v1441_v43, 0.0 }
 0x20e   : > { %v1373_v39 = vpop.f32.mrf.mxu0  ;;  %v1446_v41 = vpop.f32.mrf.mxu1  ;;  %v731_v43 = vunpack.c.l.bf16 %v4063_v38 }
 0x20f   : > { %v1374_v45 = vadd.f32 %v1373_v39, %v1269_v25  ;;  %v1447_v24 = vadd.f32 %v1446_v41, %v1269_v25  ;;  %v1476_v62 = vmax.f32 %v1370_v12, 0.0  ;;  %v1478_v3 = vmax.f32 %v1443_v48, 0.0 }
 0x210   : > { %v1375_v35 = vpop.f32.mrf.mxu0  ;;  %v1448_v36 = vpop.f32.mrf.mxu1  ;;  %v1472_v39 = vmax.f32 %v1366_v23, 0.0  ;;  %v1468_v12 = vmax.f32 %v4401_v8, 0.0  ;;  %v1470_v48 = vmax.f32 %v4403_v9, 0.0  ;;  %v1421_v8 = vadd.f32 %v4367_v17, %v4377_v54 }
 0x211   : > { %v1376_v26 = vadd.f32 %v1375_v35, %v1269_v25  ;;  %v1449_v28 = vadd.f32 %v1448_v36, %v1269_v25  ;;  %v1479_v59 = vmax.f32 %v1374_v45, 0.0  ;;  %v1481_v1 = vmax.f32 %v1447_v24, 0.0 }
 0x212   : > { %v1377_v13 = vpop.f32.mrf.mxu0  ;;  %v1450_v49 = vpop.f32.mrf.mxu1  ;;  %v1474_v25 = vmax.f32 %v1439_v44, 0.0  ;;  %v1466_v9 = vmax.f32 %v4395_v30, 0.0  ;;  %v1462_v23 = vmax.f32 %v4389_v34, 0.0  ;;  %v1344_v17 = vadd.f32 %v4361_v32, %v4375_v60 }
 0x213   : > { %v1378_v19 = vadd.f32 %v1377_v13, %v1274_v20  ;;  %v1451_v22 = vadd.f32 %v1450_v49, %v1274_v20  ;;  %v1480_v63 = vmax.f32 %v1376_v26, 0.0  ;;  %v1482_v58 = vmax.f32 %v1449_v28, 0.0 }
 0x214   : > { %v1379_v61 = vpop.f32.mrf.mxu0  ;;  %v1452_v10 = vpop.f32.mrf.mxu1  ;;  %v1364_v13 = vadd.f32 %v1363_v15, %v1259_v46  ;;  %v1437_v49 = vadd.f32 %v1436_v52, %v1259_v46  ;;  %v1496_v26 = vpack.c.bf16 %v1476_v62, %v1472_v39  ;;  %v1498_v28 = vpack.c.bf16 %v1478_v3, %v1474_v25 }
 0x215   : > { %v1380_v51 = vadd.f32 %v1379_v61, %v1274_v20  ;;  %v1453_v14 = vadd.f32 %v1452_v10, %v1274_v20  ;;  %v1483_v5 = vmax.f32 %v1378_v19, 0.0  ;;  %v1485_v18 = vmax.f32 %v1451_v22, 0.0 }
 0x216   : > { %v1354_v46 = vadd.f32 %v4369_v11, %v4373_v2  ;;  %v1427_v15 = vadd.f32 %v4371_v21, %v4373_v2  ;;  %v1348_v52 = vadd.f32 %v4365_v16, %v4377_v54  ;;  %v1467_v11 = vmax.f32 %v4397_v31, 0.0 }
 0x217   : > { %v1484_v35 = vmax.f32 %v1380_v51, 0.0  ;;  %v1486_v36 = vmax.f32 %v1453_v14, 0.0  ;;  %v1499_v4 = vpack.c.bf16 %v1483_v5, %v1479_v59  ;;  %v1501_v20 = vpack.c.bf16 %v1485_v18, %v1481_v1  ;;  %v3808_v18 = vld [vmem:[%s4013_s25] sm:$0xff] }
 0x218   : > { %v1469_v21 = vmax.f32 %v4399_v7, 0.0  ;;  %v1460_v22 = vmax.f32 %v4386_v27, 0.0  ;;  %v1494_v44 = vpack.c.bf16 %v1470_v48, %v1466_v9  ;;  %v1417_v54 = vadd.f32 %v4363_v33, %v4375_v60  ;;  %v4476_v9 = vld [vmem:[%s4013_s25 + $0xe8] ss:$16 sps:$4 sm:$0xff]  }
 0x219   : > { %v1500_v41 = vpack.c.bf16 %v1484_v35, %v1480_v63  ;;  %v1502_v57 = vpack.c.bf16 %v1486_v36, %v1482_v58  ;;  %v1471_v63 = vmax.f32 %v1364_v13, 0.0  ;;  %v1473_v58 = vmax.f32 %v1437_v49, 0.0  ;;  %5350 = vst [vmem:[#allocation19_spill] sm:$0xff] %v4476_v9 }
 0x21a   : > { %v1465_v30 = vmax.f32 %v1427_v15, 0.0  ;;  %v1456_v31 = vmax.f32 %v4380_v6, 0.0  ;;  %v1458_v7 = vmax.f32 %v4383_v55, 0.0  ;;  %v1459_v27 = vmax.f32 %v1348_v52, 0.0  ;;  %v1503_v6 = vld [vmem:[%s5343_s23] sm:$0x3]  ;;  %v1508_v55 = vpop.permute.xlu0 %1507 }
 0x21b   : > { %1521 = vmatprep.subr.bf16.mxu0 %v1500_v41  ;;  %1562 = vmatprep.subr.bf16.mxu1 %v1502_v57  ;;  %v1464_v57 = vmax.f32 %v4392_v37, 0.0  ;;  %v1495_v2 = vpack.c.bf16 %v1475_v0, %v1471_v63  ;;  %v1497_v19 = vpack.c.bf16 %v1477_v47, %v1473_v58  ;;  %v1463_v37 = vmax.f32 %v1354_v46, 0.0  ;;  %v3768_v58 = vld [vmem:[%s5250_s7] sm:$0xff]   ;;  %s3672_s23 = sshll.u32 %s5426_s2, 4 }
 0x21c   : > { %1522 = vmatpush1.bf16.msra.mxu0 %v1499_v4  ;;  %1563 = vmatpush1.bf16.msra.mxu1 %v1501_v20  ;;  %v1461_v34 = vmax.f32 %v1421_v8, 0.0  ;;  %v1493_v24 = vpack.c.bf16 %v1469_v21, %v1465_v30  ;;  %v1488_v61 = vpack.c.bf16 %v1460_v22, %v1456_v31  ;;  %v1490_v10 = vpack.c.bf16 %v1462_v23, %v1458_v7  ;;  %v4462_v52 = vld [vmem:[%s4013_s25 + $0xe4] ss:$16 sps:$4 sm:$0xff]   ;;  %v4466_v8 = vld [vmem:[%s4013_s25 + $0xec] ss:$16 sps:$4 sm:$0xff]   ;;  %s694_s5 = scalar_lea.vmem %s5264_s21, %s3672_s23 }
 0x21d   : > { %1523 = vmatprep.subr.bf16.mxu0 %v1496_v26  ;;  %1564 = vmatprep.subr.bf16.mxu1 %v1498_v28  ;;  %v1492_v16 = vpack.c.bf16 %v1468_v12, %v1464_v57  ;;  %v1491_v45 = vpack.c.bf16 %v1467_v11, %v1463_v37  ;;  %v1455_v32 = vmax.f32 %v1344_v17, 0.0  ;;  %v1457_v42 = vmax.f32 %v1417_v54, 0.0  ;;  %5347 = vst [vmem:[#allocation16_spill] sm:$0xff] %v4462_v52  ;;  %v4472_v57 = vld [vmem:[%s4013_s25 + $0xe0] ss:$16 sps:$4 sm:$0xff]  }
 0x21e   : > { %v733_v51 = vunpack.c.l.bf16 %v4067_v40  ;;  %v732_v35 = vunpack.c.h.bf16 %v3808_v18  ;;  %v734_v36 = vunpack.c.h.bf16 %v4067_v40  ;;  %5348 = vst [vmem:[#allocation17_spill] sm:$0xff] %v4466_v8  ;;  %5349 = vst [vmem:[#allocation18_spill] sm:$0xff] %v4472_v57  ;;  %v4480_v11 = vld [vmem:[%s4013_s25 + $0xc4] ss:$16 sps:$4 sm:$0xff]   ;;  %v4484_v21 = vld [vmem:[%s4013_s25 + $0xcc] ss:$16 sps:$4 sm:$0xff]  }
 0x21f   : > { %v1487_v33 = vpack.c.bf16 %v1459_v27, %v1455_v32  ;;  %v1489_v60 = vpack.c.bf16 %v1461_v34, %v1457_v42  ;;  %5351 = vst [vmem:[#allocation20_spill] sm:$0xff] %v4480_v11  ;;  %5352 = vst [vmem:[#allocation21_spill] sm:$0xff] %v4484_v21  ;;  %v4497_v22 = vld [vmem:[%s4013_s25 + $0xc8] ss:$16 sps:$4 sm:$0xff]   ;;  %v4501_v23 = vld [vmem:[%s4013_s25 + $0xa4] ss:$16 sps:$4 sm:$0xff]  }
 0x220   : > { %1524 = vmatpush1.bf16.msra.mxu0 %v1495_v2  ;;  %1565 = vmatpush1.bf16.msra.mxu1 %v1497_v19  ;;  %v3769_v2 = vld [vmem:[%s5250_s7 + $0x8] sm:$0xff]   ;;  %v4493_v19 = vld [vmem:[%s4013_s25 + $0xc0] ss:$16 sps:$4 sm:$0xff]   ;;  %5354 = vst [vmem:[#allocation23_spill] sm:$0xff] %v4497_v22  ;;  %5355 = vst [vmem:[#allocation24_spill] sm:$0xff] %v4501_v23 }
 0x221   : > { %1525 = vmatprep.subr.bf16.mxu0 %v1492_v16  ;;  %1566 = vmatprep.subr.bf16.mxu1 %v1494_v44  ;;  %5353 = vst [vmem:[#allocation22_spill] sm:$0xff] %v4493_v19  ;;  %v4505_v16 = vld [vmem:[%s4013_s25 + $0xac] ss:$16 sps:$4 sm:$0xff]   ;;  %v4511_v44 = vld [vmem:[%s4013_s25 + $0xa0] ss:$16 sps:$4 sm:$0xff]  }
 0x222   : > { %5356 = vst [vmem:[#allocation25_spill] sm:$0xff] %v4505_v16  ;;  %5357 = vst [vmem:[#allocation26_spill] sm:$0xff] %v4511_v44  ;;  %v4515_v17 = vld [vmem:[%s4013_s25 + $0xa8] ss:$16 sps:$4 sm:$0xff]   ;;  %v4519_v54 = vld [vmem:[%s4013_s25 + $0x84] ss:$16 sps:$4 sm:$0xff]  }
 0x223   : > { %5358 = vst [vmem:[#allocation27_spill] sm:$0xff] %v4515_v17  ;;  %5359 = vst [vmem:[#allocation28_spill] sm:$0xff] %v4519_v54  ;;  %v4523_v37 = vld [vmem:[%s4013_s25 + $0x8c] ss:$16 sps:$4 sm:$0xff]   ;;  %v3770_v30 = vld [vmem:[%s5250_s7 + $0x10] sm:$0xff]  }
 0x224   : > { %1526 = vmatpush1.bf16.msra.mxu0 %v1491_v45  ;;  %1567 = vmatpush1.bf16.msra.mxu1 %v1493_v24  ;;  %5360 = vst [vmem:[#allocation29_spill] sm:$0xff] %v4523_v37  ;;  %v4532_v31 = vld [vmem:[%s4013_s25 + $0x80] ss:$16 sps:$4 sm:$0xff]   ;;  %v4536_v7 = vld [vmem:[%s4013_s25 + $0x88] ss:$16 sps:$4 sm:$0xff]  }
 0x225   : > { %1527 = vmatprep.subr.bf16.mxu0 %v1488_v61  ;;  %1568 = vmatprep.subr.bf16.mxu1 %v1490_v10  ;;  %5361 = vst [vmem:[#allocation30_spill] sm:$0xff] %v4532_v31  ;;  %5362 = vst [vmem:[#allocation31_spill] sm:$0xff] %v4536_v7  ;;  %v4540_v27 = vld [vmem:[%s4013_s25 + $0x64] ss:$16 sps:$4 sm:$0xff]   ;;  %v4544_v34 = vld [vmem:[%s4013_s25 + $0x6c] ss:$16 sps:$4 sm:$0xff]  }
 0x226   : > { %5363 = vst [vmem:[#allocation32_spill] sm:$0xff] %v4540_v27  ;;  %5364 = vst [vmem:[#allocation33_spill] sm:$0xff] %v4544_v34  ;;  %v4550_v45 = vld [vmem:[%s4013_s25 + $0x60] ss:$16 sps:$4 sm:$0xff]   ;;  %v4554_v24 = vld [vmem:[%s4013_s25 + $0x68] ss:$16 sps:$4 sm:$0xff]  }
 0x227   : > { %5365 = vst [vmem:[#allocation34_spill] sm:$0xff] %v4550_v45  ;;  %5366 = vst [vmem:[#allocation35_spill] sm:$0xff] %v4554_v24  ;;  %v4558_v61 = vld [vmem:[%s4013_s25 + $0x44] ss:$16 sps:$4 sm:$0xff]   ;;  %v4562_v10 = vld [vmem:[%s4013_s25 + $0x4c] ss:$16 sps:$4 sm:$0xff]  }
 0x228   : > { %1528 = vmatpush1.bf16.msra.mxu0 %v1487_v33  ;;  %1569 = vmatpush1.bf16.msra.mxu1 %v1489_v60  ;;  %5367 = vst [vmem:[#allocation36_spill] sm:$0xff] %v4558_v61  ;;  %5368 = vst [vmem:[#allocation37_spill] sm:$0xff] %v4562_v10  ;;  %v3771_v32 = vld [vmem:[%s5250_s7 + $0x18] sm:$0xff]   ;;  %v4571_v42 = vld [vmem:[%s4013_s25 + $0x40] ss:$16 sps:$4 sm:$0xff]  }
 0x229   : > { %5369 = vst [vmem:[#allocation38_spill] sm:$0xff] %v4571_v42  ;;  %v4575_v33 = vld [vmem:[%s4013_s25 + $0x48] ss:$16 sps:$4 sm:$0xff]   ;;  %v4579_v60 = vld [vmem:[%s4013_s25 + $0x24] ss:$16 sps:$4 sm:$0xff]  }
 0x22a   : > { %5370 = vst [vmem:[#allocation39_spill] sm:$0xff] %v4575_v33  ;;  %5371 = vst [vmem:[#allocation40_spill] sm:$0xff] %v4579_v60  ;;  %v3772_v18 = vld [vmem:[%s5251_s8] ss:$8 sps:$4 sm:$0xff]  }
 0x22b   : > { %3584 = vmatmul.mubr.msk.bf16.vlgmr.msra.gmra.mxu0 %vm1296_vm3, %v1503_v6  ;;  %3585 = vmatmul.mubr.msk.bf16.vlgmr.msra.gmra.mxu1 %vm1296_vm3, %v1503_v6  ;;  %v4583_v6 = vld [vmem:[%s4013_s25 + $0x2c] ss:$16 sps:$4 sm:$0xff]  }
 0x22c   : > { %1695 = vmatprep.mubr.bf16.mxu0 %v5342_v29  ;;  %1768 = vmatprep.mubr.bf16.mxu1 %v5342_v29  ;;  %5372 = vst [vmem:[#allocation41_spill] sm:$0xff] %v4583_v6 }
 0x2eb   : > { %v1547_v14 = vpop.f32.mrf.mxu0  ;;  %v1588_v62 = vpop.f32.mrf.mxu1 }
 0x2ec   : > { %v1548_v3 = vadd.f32 %v1547_v14, %v1508_v55  ;;  %v1589_v5 = vadd.f32 %v1588_v62, %v1508_v55  ;;  %v5375_v14 = vld [vmem:[#allocation7_spill] sm:$0xff]  ;;  %v5376_v62 = vld [vmem:[#allocation8_spill] sm:$0xff] }
 0x2ed   : > { %v1549_v13 = vpop.f32.mrf.mxu0  ;;  %v1590_v49 = vpop.f32.mrf.mxu1 }
 0x2ee   : > { %v4438_v59 = vadd.f32 %v1548_v3, %v731_v43  ;;  %v4440_v1 = vadd.f32 %v1589_v5, %v733_v51  ;;  %v1550_v39 = vadd.f32 %v1549_v13, %v1508_v55  ;;  %v1591_v25 = vadd.f32 %v1590_v49, %v1508_v55  ;;  %v3774_v55 = vld [vmem:[%s5251_s8 + $0x4] ss:$8 sps:$4 sm:$0xff]   ;;  %v4592_v43 = vld [vmem:[%s4013_s25 + $0x20] ss:$16 sps:$4 sm:$0xff]   ;;  %v4596_v51 = vld [vmem:[%s4013_s25 + $0x28] ss:$16 sps:$4 sm:$0xff]  }
 0x2ef   : > { %v1551_v41 = vpop.f32.mrf.mxu0  ;;  %v1592_v38 = vpop.f32.mrf.mxu1  ;;  %5373 = vst [vmem:[#allocation42_spill] sm:$0xff] %v4592_v43  ;;  %5374 = vst [vmem:[#allocation43_spill] sm:$0xff] %v4596_v51  ;;  %v5377_v3 = vld [vmem:[#allocation9_spill] sm:$0xff]  ;;  %v5378_v5 = vld [vmem:[#allocation10_spill] sm:$0xff] }
 0x2f0   : > { %5344 = vst [vmem:[#allocation13_spill] sm:$0xff] %v4440_v1  ;;  %v4442_v0 = vadd.f32 %v1550_v39, %v732_v35  ;;  %v4444_v47 = vadd.f32 %v1591_v25, %v734_v36  ;;  %v1607_v4 = vpack.c.bf16 %v4438_v59, %v4438_v59  ;;  %v1609_v40 = vpack.c.bf16 %v4440_v1, %v4440_v1  ;;  %v5379_v35 = vld [vmem:[#allocation11_spill] sm:$0xff]  ;;  %v5380_v36 = vld [vmem:[#allocation12_spill] sm:$0xff] }
 0x2f1   : > { %v1552_v20 = vpop.f32.mrf.mxu0  ;;  %v1593_v12 = vpop.f32.mrf.mxu1  ;;  %v3775_v13 = vld [vmem:[%s5251_s8 + $0x14] ss:$8 sps:$4 sm:$0xff]   ;;  %v3777_v49 = vld [vmem:[%s5251_s8 + $0x10] ss:$8 sps:$4 sm:$0xff]   ;;  %v3778_v39 = vld [vmem:[%s5251_s8 + $0x24] ss:$8 sps:$4 sm:$0xff]  }
 0x2f2   : > { %5345 = vst [vmem:[#allocation14_spill] sm:$0xff] %v4442_v0  ;;  %5346 = vst [vmem:[#allocation15_spill] sm:$0xff] %v4444_v47  ;;  %v1608_v48 = vpack.c.bf16 %v4442_v0, %v4442_v0  ;;  %v1610_v26 = vpack.c.bf16 %v4444_v47, %v4444_v47  ;;  %v1652_v15 = vand.u32 %v1607_v4, %v4093_v56  ;;  %v3780_v25 = vld [vmem:[%s5251_s8 + $0x20] ss:$8 sps:$4 sm:$0xff]   ;;  %v3781_v41 = vld [vmem:[%s5251_s8 + $0x34] ss:$8 sps:$4 sm:$0xff]  }
 0x2f3   : > { %v1658_v63 = vand.u32 %v1609_v40, %v4093_v56  ;;  %v3783_v38 = vld [vmem:[%s5251_s8 + $0x30] ss:$8 sps:$4 sm:$0xff]  }
 0x2f4   : > { %v1655_v28 = vand.u32 %v1608_v48, %v4093_v56  ;;  %v1661_v46 = vand.u32 %v1610_v26, %v4093_v56 }
 0x2f6   : > { %1677 = vmatprep.subr.bf16.mxu0 %v1655_v28  ;;  %1750 = vmatprep.subr.bf16.mxu1 %v1661_v46 }
 0x2f7   : > { %1678 = vmatpush1.bf16.msra.mxu0 %v1652_v15  ;;  %1751 = vmatpush1.bf16.msra.mxu1 %v1658_v63 }
 0x2f8   : > { %1857 = vmatprep.subr.bf16.mxu0 %v4462_v52  ;;  %1930 = vmatprep.subr.bf16.mxu1 %v4466_v8 }
 0x2fa   : > { %3590 = vmatmul.mubr.msk.bf16.vlgmr.msra.gmra.mxu0 %vm997_vm0, %v3768_v58  ;;  %3594 = vmatmul.mubr.msk.bf16.vlgmr.msra.gmra.mxu1 %vm997_vm0, %v3768_v58 }
 0x2fb   : > { %1858 = vmatpush1.bf16.msra.mxu0 %v4472_v57  ;;  %1931 = vmatpush1.bf16.msra.mxu1 %v4476_v9 }
 0x2fc   : > { %1859 = vmatprep.subr.bf16.mxu0 %v4480_v11  ;;  %1932 = vmatprep.subr.bf16.mxu1 %v4484_v21 }
 0x2fd   : > { %1705 = vmatprep.mubr.bf16.mxu0 %v5342_v29  ;;  %1778 = vmatprep.mubr.bf16.mxu1 %v5342_v29 }
 0x2ff   : > { %1860 = vmatpush1.bf16.msra.mxu0 %v4493_v19  ;;  %1933 = vmatpush1.bf16.msra.mxu1 %v4497_v22 }
 0x300   : > { %1861 = vmatprep.subr.bf16.mxu0 %v4501_v23  ;;  %1934 = vmatprep.subr.bf16.mxu1 %v4505_v16 }
 0x302   : > { %3591 = vmatmul.mubr.msk.bf16.gmra.mxu0 %vm997_vm0, %v3769_v2  ;;  %3595 = vmatmul.mubr.msk.bf16.gmra.mxu1 %vm997_vm0, %v3769_v2 }
 0x303   : > { %1862 = vmatpush1.bf16.msra.mxu0 %v4511_v44  ;;  %1935 = vmatpush1.bf16.msra.mxu1 %v4515_v17 }
 0x304   : > { %1863 = vmatprep.subr.bf16.mxu0 %v4519_v54  ;;  %1936 = vmatprep.subr.bf16.mxu1 %v4523_v37 }
 0x305   : > { %1715 = vmatprep.mubr.bf16.mxu0 %v5342_v29  ;;  %1788 = vmatprep.mubr.bf16.mxu1 %v5342_v29 }
 0x307   : > { %1864 = vmatpush1.bf16.msra.mxu0 %v4532_v31  ;;  %1937 = vmatpush1.bf16.msra.mxu1 %v4536_v7 }
 0x308   : > { %1865 = vmatprep.subr.bf16.mxu0 %v4540_v27  ;;  %1938 = vmatprep.subr.bf16.mxu1 %v4544_v34 }
 0x30a   : > { %3592 = vmatmul.mubr.msk.bf16.gmra.mxu0 %vm997_vm0, %v3770_v30  ;;  %3596 = vmatmul.mubr.msk.bf16.gmra.mxu1 %vm997_vm0, %v3770_v30 }
 0x30b   : > { %1866 = vmatpush1.bf16.msra.mxu0 %v4550_v45  ;;  %1939 = vmatpush1.bf16.msra.mxu1 %v4554_v24 }
 0x30c   : > { %1867 = vmatprep.subr.bf16.mxu0 %v4558_v61  ;;  %1940 = vmatprep.subr.bf16.mxu1 %v4562_v10 }
 0x30d   : > { %1725 = vmatprep.mubr.bf16.mxu0 %v5342_v29  ;;  %1798 = vmatprep.mubr.bf16.mxu1 %v5342_v29 }
 0x30f   : > { %1868 = vmatpush1.bf16.msra.mxu0 %v4571_v42  ;;  %1941 = vmatpush1.bf16.msra.mxu1 %v4575_v33 }
 0x310   : > { %1869 = vmatprep.subr.bf16.mxu0 %v4579_v60  ;;  %1942 = vmatprep.subr.bf16.mxu1 %v4583_v6 }
 0x312   : > { %3593 = vmatmul.mubr.msk.bf16.gmra.mxu0 %vm997_vm0, %v3771_v32  ;;  %3597 = vmatmul.mubr.msk.bf16.gmra.mxu1 %vm997_vm0, %v3771_v32 }
 0x313   : > { %1870 = vmatpush1.bf16.msra.mxu0 %v4592_v43  ;;  %1943 = vmatpush1.bf16.msra.mxu1 %v4596_v51 }
 0x314   : > { %1871 = vmatprep.subr.bf16.mxu0 %v4081_v50  ;;  %1944 = vmatprep.subr.bf16.mxu1 %v4090_v53 }
 0x315   : > { %3606 = vmatprep.mubr.msk.bf16.mxu0 %vm997_vm0, %v3774_v55  ;;  %3610 = vmatprep.mubr.msk.bf16.mxu1 %vm997_vm0, %v3774_v55 }
 0x317   : > { %1872 = vmatpush1.bf16.msra.mxu0 %v5375_v14  ;;  %1945 = vmatpush1.bf16.msra.mxu1 %v5376_v62  ;;  %v4676_v14 = vpop.permute.xlu0 %2048 }
 0x318   : > { %1887 = vmatprep.subr.bf16.mxu0 %v5377_v3  ;;  %1960 = vmatprep.subr.bf16.mxu1 %v5378_v5  ;;  %v4670_v5 = vpop.permute.xlu1 %2043 }
 0x31b   : > { %1888 = vmatpush2.bf16.msra.mxu0 %v5379_v35  ;;  %1961 = vmatpush2.bf16.msra.mxu1 %v5380_v36  ;;  %v4688_v60 = vpop.permute.xlu0 %2038 }
 0x31c   : > { %v4682_v51 = vpop.permute.xlu1 %2033 }
 0x31e   : > { %1890 = vmatmul.mubr.bf16.vlgmr.msra.gmra.mxu0 %v3772_v18  ;;  %1963 = vmatmul.mubr.bf16.vlgmr.msra.gmra.mxu1 %v3772_v18 }
 0x31f   : > { %3607 = vmatprep.mubr.msk.bf16.mxu0 %vm997_vm0, %v3775_v13  ;;  %3611 = vmatprep.mubr.msk.bf16.mxu1 %vm997_vm0, %v3775_v13  ;;  %v4696_v45 = vpop.permute.xlu0 %2028 }
 0x320   : > { %v4694_v10 = vpop.permute.xlu1 %2023 }
 0x323   : > { %v2019_v57 = vpop.permute.xlu0 %2018 }
 0x324   : > { %v2014_v16 = vpop.permute.xlu1 %2013 }
 0x326   : > { %1900 = vmatmul.mubr.bf16.gmra.mxu0 %v3777_v49  ;;  %1973 = vmatmul.mubr.bf16.gmra.mxu1 %v3777_v49 }
 0x327   : > { %3608 = vmatprep.mubr.msk.bf16.mxu0 %vm997_vm0, %v3778_v39  ;;  %3612 = vmatprep.mubr.msk.bf16.mxu1 %vm997_vm0, %v3778_v39 }
 0x32e   : > { %1910 = vmatmul.mubr.bf16.gmra.mxu0 %v3780_v25  ;;  %1983 = vmatmul.mubr.bf16.gmra.mxu1 %v3780_v25 }
 0x32f   : > { %3609 = vmatprep.mubr.msk.bf16.mxu0 %vm997_vm0, %v3781_v41  ;;  %3613 = vmatprep.mubr.msk.bf16.mxu1 %vm997_vm0, %v3781_v41 }
 0x336   : > { %1920 = vmatmul.mubr.bf16.gmra.mxu0 %v3783_v38  ;;  %1993 = vmatmul.mubr.bf16.gmra.mxu1 %v3783_v38 }
 0x337   : > { %2251 = vmatprep.mubr.bf16.mxu0 %v5342_v29  ;;  %2324 = vmatprep.mubr.bf16.mxu1 %v5342_v29 }
 0x3ba   : > { %v1697_v4 = vpop.f32.mrf.mxu0  ;;  %v1770_v40 = vpop.f32.mrf.mxu1 }
 0x3bc   : > { %v1699_v20 = vpop.f32.mrf.mxu0  ;;  %v1772_v12 = vpop.f32.mrf.mxu1 }
 0x3be   : > { %v1701_v48 = vpop.f32.mrf.mxu0  ;;  %v1774_v26 = vpop.f32.mrf.mxu1 }
 0x3c0   : > { %v1703_v28 = vpop.f32.mrf.mxu0  ;;  %v1776_v46 = vpop.f32.mrf.mxu1 }
 0x3c2   : > { %v4638_v15 = vpop.f32.mrf.mxu0  ;;  %v4640_v63 = vpop.f32.mrf.mxu1 }
 0x3c4   : > { %v4642_v58 = vpop.f32.mrf.mxu0  ;;  %v4644_v2 = vpop.f32.mrf.mxu1 }
 0x3c6   : > { %v4646_v30 = vpop.f32.mrf.mxu0  ;;  %v4648_v32 = vpop.f32.mrf.mxu1 }
 0x3c8   : > { %v4650_v55 = vpop.f32.mrf.mxu0  ;;  %v4652_v18 = vpop.f32.mrf.mxu1 }
 0x3ca   : > { %v4654_v13 = vpop.f32.mrf.mxu0  ;;  %v4656_v49 = vpop.f32.mrf.mxu1 }
 0x3cc   : > { %v4658_v39 = vpop.f32.mrf.mxu0  ;;  %v4660_v25 = vpop.f32.mrf.mxu1 }
 0x3ce   : > { %v4662_v41 = vpop.f32.mrf.mxu0  ;;  %v4664_v38 = vpop.f32.mrf.mxu1 }
 0x3d0   : > { %v4666_v36 = vpop.f32.mrf.mxu0  ;;  %v4668_v35 = vpop.f32.mrf.mxu1 }
 0x3d2   : > { %v4672_v3 = vpop.f32.mrf.mxu0  ;;  %v4674_v62 = vpop.f32.mrf.mxu1 }
 0x3d4   : > { %v4678_v53 = vpop.f32.mrf.mxu0  ;;  %v4680_v50 = vpop.f32.mrf.mxu1 }
 0x3d6   : > { %v4684_v43 = vpop.f32.mrf.mxu0  ;;  %v4686_v6 = vpop.f32.mrf.mxu1 }
 0x3d8   : > { %v4690_v33 = vpop.f32.mrf.mxu0  ;;  %v4692_v42 = vpop.f32.mrf.mxu1 }
 0x3de   : > { %v1891_v61 = vpop.f32.mrf.mxu0  ;;  %v1964_v24 = vpop.f32.mrf.mxu1 }
 0x3df   : > { %v1892_v34 = vadd.f32 %v1891_v61, %v1697_v4  ;;  %v1965_v27 = vadd.f32 %v1964_v24, %v1770_v40 }
 0x3e0   : > { %v1893_v7 = vpop.f32.mrf.mxu0  ;;  %v1966_v31 = vpop.f32.mrf.mxu1 }
 0x3e1   : > { %v1894_v37 = vadd.f32 %v1893_v7, %v1699_v20  ;;  %v1967_v54 = vadd.f32 %v1966_v31, %v1772_v12  ;;  %v2051_v23 = vadd.f32 %v2014_v16, %v1892_v34  ;;  %v2053_v22 = vadd.f32 %v2014_v16, %v1965_v27 }
 0x3e2   : > { %v1895_v17 = vpop.f32.mrf.mxu0  ;;  %v1968_v44 = vpop.f32.mrf.mxu1 }
 0x3e3   : > { %v1896_v19 = vadd.f32 %v1895_v17, %v1701_v48  ;;  %v1969_v21 = vadd.f32 %v1968_v44, %v1774_v26  ;;  %v2052_v56 = vadd.f32 %v2014_v16, %v1894_v37  ;;  %v2054_v47 = vadd.f32 %v2014_v16, %v1967_v54 }
 0x3e4   : > { %v1897_v11 = vpop.f32.mrf.mxu0  ;;  %v1970_v9 = vpop.f32.mrf.mxu1  ;;  %v2083_v20 = vmax.f32 %v2051_v23, 0.0  ;;  %v2085_v12 = vmax.f32 %v2053_v22, 0.0 }
 0x3e5   : > { %v1898_v8 = vadd.f32 %v1897_v11, %v1703_v28  ;;  %v1971_v52 = vadd.f32 %v1970_v9, %v1776_v46  ;;  %v2055_v61 = vadd.f32 %v2019_v57, %v1896_v19  ;;  %v2057_v24 = vadd.f32 %v2019_v57, %v1969_v21 }
 0x3e6   : > { %v1901_v4 = vpop.f32.mrf.mxu0  ;;  %v1974_v40 = vpop.f32.mrf.mxu1  ;;  %v2084_v26 = vmax.f32 %v2052_v56, 0.0  ;;  %v2086_v1 = vmax.f32 %v2054_v47, 0.0 }
 0x3e7   : > { %v2056_v7 = vadd.f32 %v2019_v57, %v1898_v8  ;;  %v2058_v31 = vadd.f32 %v2019_v57, %v1971_v52  ;;  %v2087_v0 = vmax.f32 %v2055_v61, 0.0  ;;  %v2089_v34 = vmax.f32 %v2057_v24, 0.0 }
 0x3e8   : > { %v1903_v27 = vpop.f32.mrf.mxu0  ;;  %v1976_v17 = vpop.f32.mrf.mxu1 }
 0x3e9   : > { %v2088_v44 = vmax.f32 %v2056_v7, 0.0  ;;  %v2090_v48 = vmax.f32 %v2058_v31, 0.0  ;;  %v4698_v11 = vpack.c.bf16 %v2087_v0, %v2083_v20  ;;  %v4700_v9 = vpack.c.bf16 %v2089_v34, %v2085_v12 }
 0x3ea   : > { %v1905_v19 = vpop.f32.mrf.mxu0  ;;  %v1978_v21 = vpop.f32.mrf.mxu1  ;;  %v1904_v56 = vadd.f32 %v1903_v27, %v4642_v58  ;;  %v1977_v0 = vadd.f32 %v1976_v17, %v4644_v2  ;;  %v4713_v20 = vadd.f32 %v1901_v4, %v4638_v15  ;;  %v4716_v12 = vadd.f32 %v1974_v40, %v4640_v63 }
 0x3eb   : > { %v4702_v8 = vpack.c.bf16 %v2088_v44, %v2084_v26  ;;  %v4704_v52 = vpack.c.bf16 %v2090_v48, %v2086_v1  ;;  %v1906_v47 = vadd.f32 %v1905_v19, %v4646_v30  ;;  %v1979_v61 = vadd.f32 %v1978_v21, %v4648_v32 }
 0x3ec   : > { %v1907_v16 = vpop.f32.mrf.mxu0  ;;  %v1980_v54 = vpop.f32.mrf.mxu1  ;;  %v4719_v2 = vadd.f32 %v4694_v10, %v1904_v56  ;;  %v4722_v30 = vadd.f32 %v4694_v10, %v1977_v0 }
 0x3ed   : > { %v1908_v24 = vadd.f32 %v1907_v16, %v4650_v55  ;;  %v1981_v7 = vadd.f32 %v1980_v54, %v4652_v18  ;;  %v4725_v32 = vadd.f32 %v4696_v45, %v1906_v47  ;;  %v4728_v55 = vadd.f32 %v4696_v45, %v1979_v61 }
 0x3ee   : > { %v1911_v57 = vpop.f32.mrf.mxu0  ;;  %v1984_v22 = vpop.f32.mrf.mxu1 }
 0x3ef   : > { %v4731_v15 = vadd.f32 %v4696_v45, %v1908_v24  ;;  %v4734_v63 = vadd.f32 %v4696_v45, %v1981_v7  ;;  %v1912_v17 = vadd.f32 %v1911_v57, %v4654_v13  ;;  %v1985_v44 = vadd.f32 %v1984_v22, %v4656_v49 }
 0x3f0   : > { %v1913_v23 = vpop.f32.mrf.mxu0  ;;  %v1986_v37 = vpop.f32.mrf.mxu1 }
 0x3f1   : > { %v1914_v48 = vadd.f32 %v1913_v23, %v4658_v39  ;;  %v1987_v26 = vadd.f32 %v1986_v37, %v4660_v25 }
 0x3f2   : > { %v1915_v28 = vpop.f32.mrf.mxu0  ;;  %v1988_v46 = vpop.f32.mrf.mxu1 }
 0x3f3   : > { %v1916_v54 = vadd.f32 %v1915_v28, %v4662_v41  ;;  %v1989_v13 = vadd.f32 %v1988_v46, %v4664_v38  ;;  %v2070_v23 = vadd.f32 %v4682_v51, %v1987_v26 }
 0x3f4   : > { %v1917_v1 = vpop.f32.mrf.mxu0  ;;  %v1990_v31 = vpop.f32.mrf.mxu1 }
 0x3f5   : > { %v1918_v18 = vadd.f32 %v1917_v1, %v4666_v36  ;;  %v1991_v4 = vadd.f32 %v1990_v31, %v4668_v35  ;;  %v2071_v46 = vadd.f32 %v4688_v60, %v1916_v54  ;;  %v2073_v56 = vadd.f32 %v4688_v60, %v1989_v13 }
 0x3f6   : > { %v1921_v34 = vpop.f32.mrf.mxu0  ;;  %v1994_v58 = vpop.f32.mrf.mxu1  ;;  %v2092_v13 = vmax.f32 %v4719_v2, 0.0 }
 0x3f7   : > { %v1922_v19 = vadd.f32 %v1921_v34, %v4672_v3  ;;  %v1995_v21 = vadd.f32 %v1994_v58, %v4674_v62  ;;  %v2072_v25 = vadd.f32 %v4688_v60, %v1918_v18  ;;  %v2074_v3 = vadd.f32 %v4688_v60, %v1991_v4 }
 0x3f8   : > { %v1923_v40 = vpop.f32.mrf.mxu0  ;;  %v1996_v27 = vpop.f32.mrf.mxu1  ;;  %v2067_v58 = vadd.f32 %v4682_v51, %v1912_v17  ;;  %v2102_v60 = vmax.f32 %v2070_v23, 0.0  ;;  %v2103_v26 = vmax.f32 %v2071_v46, 0.0 }
 0x3f9   : > { %v1924_v45 = vadd.f32 %v1923_v40, %v4678_v53  ;;  %v1997_v36 = vadd.f32 %v1996_v27, %v4680_v50  ;;  %v2075_v37 = vadd.f32 %v4670_v5, %v1922_v19  ;;  %v2077_v28 = vadd.f32 %v4670_v5, %v1995_v21 }
 0x3fa   : > { %v1925_v16 = vpop.f32.mrf.mxu0  ;;  %v1998_v35 = vpop.f32.mrf.mxu1  ;;  %v2104_v61 = vmax.f32 %v2072_v25, 0.0 }
 0x3fb   : > { %v1926_v49 = vadd.f32 %v1925_v16, %v4684_v43  ;;  %v1999_v39 = vadd.f32 %v1998_v35, %v4686_v6  ;;  %v2076_v62 = vadd.f32 %v4670_v5, %v1924_v45  ;;  %v2078_v53 = vadd.f32 %v4670_v5, %v1997_v36 }
 0x3fc   : > { %v1927_v57 = vpop.f32.mrf.mxu0  ;;  %v2000_v50 = vpop.f32.mrf.mxu1  ;;  %v2068_v6 = vadd.f32 %v4682_v51, %v1914_v48  ;;  %v2069_v5 = vadd.f32 %v4682_v51, %v1985_v44  ;;  %v2107_v18 = vmax.f32 %v2075_v37, 0.0  ;;  %v2109_v4 = vmax.f32 %v2077_v28, 0.0 }
 0x3fd   : > { %v2079_v22 = vadd.f32 %v4676_v14, %v1926_v49  ;;  %v2081_v41 = vadd.f32 %v4676_v14, %v1999_v39  ;;  %v1928_v38 = vadd.f32 %v1927_v57, %v4690_v33  ;;  %v2001_v43 = vadd.f32 %v2000_v50, %v4692_v42 }
 0x3fe   : > { %v2106_v33 = vmax.f32 %v2074_v3, 0.0  ;;  %v2108_v7 = vmax.f32 %v2076_v62, 0.0  ;;  %v2110_v1 = vmax.f32 %v2078_v53, 0.0  ;;  %v2100_v40 = vmax.f32 %v2068_v6, 0.0 }
 0x3ff   : > { %v2080_v0 = vadd.f32 %v4676_v14, %v1928_v38  ;;  %v2082_v47 = vadd.f32 %v4676_v14, %v2001_v43  ;;  %v2111_v24 = vmax.f32 %v2079_v22, 0.0  ;;  %v2113_v42 = vmax.f32 %v2081_v41, 0.0  ;;  %v2185_v38 = vpop.permute.xlu0 %2184  ;;  %v2180_v43 = vpop.permute.xlu1 %2179 }
 0x400   : > { %v2105_v14 = vmax.f32 %v2073_v56, 0.0  ;;  %v2096_v45 = vmax.f32 %v4731_v15, 0.0  ;;  %v2098_v36 = vmax.f32 %v4734_v63, 0.0  ;;  %v2124_v16 = vpack.c.bf16 %v2104_v61, %v2100_v40 }
 0x401   : > { %v2112_v31 = vmax.f32 %v2080_v0, 0.0  ;;  %v2114_v34 = vmax.f32 %v2082_v47, 0.0  ;;  %v2127_v19 = vpack.c.bf16 %v2111_v24, %v2107_v18  ;;  %v2129_v21 = vpack.c.bf16 %v2113_v42, %v2109_v4 }
 0x402   : > { %v2126_v17 = vpack.c.bf16 %v2106_v33, %v2102_v60  ;;  %v2059_v51 = vadd.f32 %v4694_v10, %v4713_v20  ;;  %v2061_v44 = vadd.f32 %v4694_v10, %v4716_v12  ;;  %v2099_v35 = vmax.f32 %v2067_v58, 0.0 }
 0x403   : > { %v2128_v27 = vpack.c.bf16 %v2112_v31, %v2108_v7  ;;  %v2130_v48 = vpack.c.bf16 %v2114_v34, %v2110_v1  ;;  %v2101_v54 = vmax.f32 %v2069_v5, 0.0  ;;  %v2094_v15 = vmax.f32 %v4722_v30, 0.0  ;;  %v3784_v30 = vld [vmem:[%s5253_s10] sm:$0xff]   ;;  %v2175_v0 = vpop.permute.xlu0 %2174  ;;  %v2170_v47 = vpop.permute.xlu1 %2169 }
 0x404   : > { %v2095_v63 = vmax.f32 %v4725_v32, 0.0  ;;  %v2097_v49 = vmax.f32 %v4728_v55, 0.0  ;;  %v2123_v39 = vpack.c.bf16 %v2103_v26, %v2099_v35  ;;  %v2120_v20 = vpack.c.bf16 %v2096_v45, %v2092_v13 }
 0x405   : > { %2227 = vmatprep.subr.bf16.mxu0 %v2128_v27  ;;  %2300 = vmatprep.subr.bf16.mxu1 %v2130_v48  ;;  %v2125_v25 = vpack.c.bf16 %v2105_v14, %v2101_v54  ;;  %v2122_v3 = vpack.c.bf16 %v2098_v36, %v2094_v15  ;;  %v2091_v62 = vmax.f32 %v2059_v51, 0.0  ;;  %v2093_v10 = vmax.f32 %v2061_v44, 0.0 }
 0x406   : > { %2228 = vmatpush1.bf16.msra.mxu0 %v2127_v19  ;;  %2301 = vmatpush1.bf16.msra.mxu1 %v2129_v21 }
 0x407   : > { %2229 = vmatprep.subr.bf16.mxu0 %v2124_v16  ;;  %2302 = vmatprep.subr.bf16.mxu1 %v2126_v17  ;;  %v2119_v12 = vpack.c.bf16 %v2095_v63, %v2091_v62  ;;  %v2121_v2 = vpack.c.bf16 %v2097_v49, %v2093_v10  ;;  %v2165_v31 = vpop.permute.xlu0 %2164  ;;  %v4822_v34 = vpop.permute.xlu1 %2159 }
 0x40a   : > { %2230 = vmatpush1.bf16.msra.mxu0 %v2123_v39  ;;  %2303 = vmatpush1.bf16.msra.mxu1 %v2125_v25 }
 0x40b   : > { %2231 = vmatprep.subr.bf16.mxu0 %v2120_v20  ;;  %2304 = vmatprep.subr.bf16.mxu1 %v2122_v3  ;;  %v4824_v27 = vpop.permute.xlu0 %2154  ;;  %v4826_v48 = vpop.permute.xlu1 %2149 }
 0x40e   : > { %2232 = vmatpush1.bf16.msra.mxu0 %v2119_v12  ;;  %2305 = vmatpush1.bf16.msra.mxu1 %v2121_v2 }
 0x40f   : > { %2233 = vmatprep.subr.bf16.mxu0 %v4702_v8  ;;  %2306 = vmatprep.subr.bf16.mxu1 %v4704_v52  ;;  %v3785_v8 = vld [vmem:[%s5253_s10 + $0x8] sm:$0xff]  }
 0x412   : > { %2234 = vmatpush1.bf16.msra.mxu0 %v4698_v11  ;;  %2307 = vmatpush1.bf16.msra.mxu1 %v4700_v9  ;;  %v3786_v11 = vld [vmem:[%s5253_s10 + $0x10] sm:$0xff]   ;;  %v3787_v9 = vld [vmem:[%s5253_s10 + $0x18] sm:$0xff]  }
 0x415   : > { %3618 = vmatmul.mubr.msk.bf16.vlgmr.msra.gmra.mxu0 %vm1296_vm3, %v3784_v30  ;;  %3622 = vmatmul.mubr.msk.bf16.vlgmr.msra.gmra.mxu1 %vm1296_vm3, %v3784_v30 }
 0x416   : > { %2261 = vmatprep.mubr.bf16.mxu0 %v5342_v29  ;;  %2334 = vmatprep.mubr.bf16.mxu1 %v5342_v29 }
 0x41d   : > { %3619 = vmatmul.mubr.msk.bf16.gmra.mxu0 %vm1296_vm3, %v3785_v8  ;;  %3623 = vmatmul.mubr.msk.bf16.gmra.mxu1 %vm1296_vm3, %v3785_v8 }
 0x41e   : > { %2271 = vmatprep.mubr.bf16.mxu0 %v5342_v29  ;;  %2344 = vmatprep.mubr.bf16.mxu1 %v5342_v29 }
 0x425   : > { %3620 = vmatmul.mubr.msk.bf16.gmra.mxu0 %vm1296_vm3, %v3786_v11  ;;  %3624 = vmatmul.mubr.msk.bf16.gmra.mxu1 %vm1296_vm3, %v3786_v11 }
 0x426   : > { %2281 = vmatprep.mubr.bf16.mxu0 %v5342_v29  ;;  %2354 = vmatprep.mubr.bf16.mxu1 %v5342_v29 }
 0x42d   : > { %3621 = vmatmul.mubr.msk.bf16.gmra.mxu0 %vm1296_vm3, %v3787_v9  ;;  %3625 = vmatmul.mubr.msk.bf16.gmra.mxu1 %vm1296_vm3, %v3787_v9 }
 0x42e   : > { %2455 = vmatprep.mubr.bf16.mxu0 %v5342_v29  ;;  %2496 = vmatprep.mubr.bf16.mxu1 %v5342_v29 }
 0x4d5   : > { %v4810_v52 = vpop.f32.mrf.mxu0  ;;  %v4812_v32 = vpop.f32.mrf.mxu1 }
 0x4d7   : > { %v2255_v55 = vpop.f32.mrf.mxu0  ;;  %v2328_v53 = vpop.f32.mrf.mxu1 }
 0x4d8   : > { %v4829_v26 = vadd.f32 %v2255_v55, %v4826_v48  ;;  %v4832_v14 = vadd.f32 %v2328_v53, %v4826_v48 }
 0x4d9   : > { %v4814_v57 = vpop.f32.mrf.mxu0  ;;  %v4816_v50 = vpop.f32.mrf.mxu1 }
 0x4db   : > { %v2259_v22 = vpop.f32.mrf.mxu0  ;;  %v2332_v41 = vpop.f32.mrf.mxu1 }
 0x4dc   : > { %v4835_v19 = vadd.f32 %v2259_v22, %v4824_v27  ;;  %v4838_v21 = vadd.f32 %v2332_v41, %v4824_v27 }
 0x4dd   : > { %v4818_v6 = vpop.f32.mrf.mxu0  ;;  %v4820_v23 = vpop.f32.mrf.mxu1 }
 0x4df   : > { %v2265_v37 = vpop.f32.mrf.mxu0  ;;  %v2338_v28 = vpop.f32.mrf.mxu1 }
 0x4e0   : > { %v4841_v16 = vadd.f32 %v2265_v37, %v4822_v34  ;;  %v4844_v17 = vadd.f32 %v2338_v28, %v4822_v34 }
 0x4e1   : > { %v2267_v46 = vpop.f32.mrf.mxu0  ;;  %v2340_v56 = vpop.f32.mrf.mxu1 }
 0x4e2   : > { %v4846_v51 = vadd.f32 %v2267_v46, %v2165_v31  ;;  %v4848_v44 = vadd.f32 %v2340_v56, %v2165_v31 }
 0x4e3   : > { %v2269_v61 = vpop.f32.mrf.mxu0  ;;  %v2342_v33 = vpop.f32.mrf.mxu1 }
 0x4e4   : > { %v4850_v35 = vadd.f32 %v2269_v61, %v2165_v31  ;;  %v4852_v54 = vadd.f32 %v2342_v33, %v2165_v31 }
 0x4e5   : > { %v2273_v24 = vpop.f32.mrf.mxu0  ;;  %v2346_v42 = vpop.f32.mrf.mxu1 }
 0x4e6   : > { %v2274_v31 = vadd.f32 %v2273_v24, %v2170_v47  ;;  %v2337_v24 = vadd.f32 %v4820_v23, %v4822_v34  ;;  %v2379_v23 = vmax.f32 %v4848_v44, 0.0  ;;  %v2368_v44 = vmax.f32 %v4832_v14, 0.0  ;;  %v2418_v14 = vpop.permute.xlu1 %2417 }
 0x4e7   : > { %v2275_v7 = vpop.f32.mrf.mxu0  ;;  %v2348_v1 = vpop.f32.mrf.mxu1 }
 0x4e8   : > { %v2276_v62 = vadd.f32 %v2275_v7, %v2170_v47  ;;  %v2349_v10 = vadd.f32 %v2348_v1, %v2170_v47 }
 0x4e9   : > { %v2277_v58 = vpop.f32.mrf.mxu0  ;;  %v2350_v5 = vpop.f32.mrf.mxu1 }
 0x4ea   : > { %v2278_v11 = vadd.f32 %v2277_v58, %v2175_v0  ;;  %v2351_v9 = vadd.f32 %v2350_v5, %v2175_v0 }
 0x4eb   : > { %v2279_v18 = vpop.f32.mrf.mxu0  ;;  %v2352_v4 = vpop.f32.mrf.mxu1 }
 0x4ec   : > { %v2280_v13 = vadd.f32 %v2279_v18, %v2175_v0  ;;  %v2353_v15 = vadd.f32 %v2352_v4, %v2175_v0  ;;  %v2347_v18 = vadd.f32 %v2346_v42, %v2170_v47  ;;  %v2382_v4 = vmax.f32 %v2276_v62, 0.0 }
 0x4ed   : > { %v2283_v40 = vpop.f32.mrf.mxu0  ;;  %v2356_v60 = vpop.f32.mrf.mxu1  ;;  %v2385_v58 = vmax.f32 %v2278_v11, 0.0  ;;  %v2387_v0 = vmax.f32 %v2351_v9, 0.0  ;;  %v2264_v47 = vadd.f32 %v4818_v6, %v4822_v34  ;;  %v2381_v42 = vmax.f32 %v2274_v31, 0.0 }
 0x4ee   : > { %v2284_v12 = vadd.f32 %v2283_v40, %v2180_v43  ;;  %v2357_v2 = vadd.f32 %v2356_v60, %v2180_v43  ;;  %v2386_v22 = vmax.f32 %v2280_v13, 0.0  ;;  %v2388_v41 = vmax.f32 %v2353_v15, 0.0 }
 0x4ef   : > { %v2285_v45 = vpop.f32.mrf.mxu0  ;;  %v2358_v36 = vpop.f32.mrf.mxu1  ;;  %v2377_v6 = vmax.f32 %v4846_v51, 0.0  ;;  %v2405_v34 = vpack.c.bf16 %v2385_v58, %v2381_v42  ;;  %v2366_v51 = vmax.f32 %v4829_v26, 0.0  ;;  %v2413_v26 = vld [vmem:[%s5255_s12] sm:$0x3]  ;;  %v5387_v42 = vld [vmem:[#allocation18_spill] sm:$0xff] }
 0x4f0   : > { %v2286_v39 = vadd.f32 %v2285_v45, %v2180_v43  ;;  %v2359_v25 = vadd.f32 %v2358_v36, %v2180_v43  ;;  %v2389_v7 = vmax.f32 %v2284_v12, 0.0  ;;  %v2391_v1 = vmax.f32 %v2357_v2, 0.0 }
 0x4f1   : > { %v2287_v63 = vpop.f32.mrf.mxu0  ;;  %v2360_v49 = vpop.f32.mrf.mxu1  ;;  %v2384_v43 = vmax.f32 %v2349_v10, 0.0  ;;  %v2378_v45 = vmax.f32 %v4850_v35, 0.0  ;;  %v2380_v36 = vmax.f32 %v4852_v54, 0.0  ;;  %v2406_v13 = vpack.c.bf16 %v2386_v22, %v2382_v4 }
 0x4f2   : > { %v2288_v20 = vadd.f32 %v2287_v63, %v2185_v38  ;;  %v2361_v3 = vadd.f32 %v2360_v49, %v2185_v38  ;;  %v2390_v46 = vmax.f32 %v2286_v39, 0.0  ;;  %v2392_v56 = vmax.f32 %v2359_v25, 0.0 }
 0x4f3   : > { %v2289_v30 = vpop.f32.mrf.mxu0  ;;  %v2362_v8 = vpop.f32.mrf.mxu1  ;;  %v2408_v15 = vpack.c.bf16 %v2388_v41, %v2384_v43  ;;  %v2383_v63 = vmax.f32 %v2347_v18, 0.0  ;;  %v2258_v49 = vadd.f32 %v4814_v57, %v4824_v27  ;;  %v2331_v35 = vadd.f32 %v4816_v50, %v4824_v27  ;;  %v5382_v18 = vld [vmem:[#allocation14_spill] sm:$0xff] }
 0x4f4   : > { %v2290_v55 = vadd.f32 %v2289_v30, %v2185_v38  ;;  %v2363_v53 = vadd.f32 %v2362_v8, %v2185_v38  ;;  %v2393_v37 = vmax.f32 %v2288_v20, 0.0  ;;  %v2395_v28 = vmax.f32 %v2361_v3, 0.0 }
 0x4f5   : > { %v2374_v54 = vmax.f32 %v4841_v16, 0.0  ;;  %v2376_v39 = vmax.f32 %v4844_v17, 0.0  ;;  %v2407_v25 = vpack.c.bf16 %v2387_v0, %v2383_v63  ;;  %v2370_v20 = vmax.f32 %v4835_v19, 0.0  ;;  %v5388_v63 = vld [vmem:[#allocation19_spill] sm:$0xff] }
 0x4f6   : > { %v2394_v61 = vmax.f32 %v2290_v55, 0.0  ;;  %v2396_v33 = vmax.f32 %v2363_v53, 0.0  ;;  %v2409_v5 = vpack.c.bf16 %v2393_v37, %v2389_v7  ;;  %v2411_v38 = vpack.c.bf16 %v2395_v28, %v2391_v1  ;;  %v5381_v28 = vld [vmem:[#allocation13_spill] sm:$0xff]  ;;  %v5383_v1 = vld [vmem:[#allocation15_spill] sm:$0xff] }
 0x4f7   : > { %v2372_v3 = vmax.f32 %v4838_v21, 0.0  ;;  %v2402_v57 = vpack.c.bf16 %v2378_v45, %v2374_v54  ;;  %v2404_v62 = vpack.c.bf16 %v2380_v36, %v2376_v39  ;;  %v2254_v50 = vadd.f32 %v4810_v52, %v4826_v48  ;;  %v3789_v54 = vld [vmem:[%s5257_s14 + $0x8] sm:$0xff]   ;;  %v5391_v39 = vld [vmem:[#allocation22_spill] sm:$0xff] }
 0x4f8   : > { %v2410_v40 = vpack.c.bf16 %v2394_v61, %v2390_v46  ;;  %v2412_v60 = vpack.c.bf16 %v2396_v33, %v2392_v56  ;;  %v2327_v27 = vadd.f32 %v4812_v32, %v4826_v48  ;;  %v2373_v16 = vmax.f32 %v2264_v47, 0.0  ;;  %v5385_v47 = vld [vmem:[#allocation16_spill] sm:$0xff] }
 0x4f9   : > { %v2375_v17 = vmax.f32 %v2337_v24, 0.0  ;;  %v2369_v19 = vmax.f32 %v2258_v49, 0.0  ;;  %v2371_v21 = vmax.f32 %v2331_v35, 0.0  ;;  %v2398_v2 = vpack.c.bf16 %v2370_v20, %v2366_v51  ;;  %v5386_v24 = vld [vmem:[#allocation17_spill] sm:$0xff]  ;;  %v5389_v49 = vld [vmem:[#allocation20_spill] sm:$0xff]  ;;  %v5396_v20 = vld [vmem:[#allocation27_spill] sm:$0xff] }
 0x4fa   : > { %2431 = vmatprep.subr.bf16.mxu0 %v2410_v40  ;;  %2472 = vmatprep.subr.bf16.mxu1 %v2412_v60  ;;  %v2401_v10 = vpack.c.bf16 %v2377_v6, %v2373_v16  ;;  %v2400_v30 = vpack.c.bf16 %v2372_v3, %v2368_v44  ;;  %v2365_v52 = vmax.f32 %v2254_v50, 0.0  ;;  %v2367_v8 = vmax.f32 %v2327_v27, 0.0  ;;  %v5390_v35 = vld [vmem:[#allocation21_spill] sm:$0xff]  ;;  %v5392_v6 = vld [vmem:[#allocation23_spill] sm:$0xff]  ;;  %v5397_v3 = vld [vmem:[#allocation28_spill] sm:$0xff] }
 0x4fb   : > { %2432 = vmatpush1.bf16.msra.mxu0 %v2409_v5  ;;  %2473 = vmatpush1.bf16.msra.mxu1 %v2411_v38  ;;  %v2403_v12 = vpack.c.bf16 %v2379_v23, %v2375_v17  ;;  %v5384_v38 = vld [vmem:[#allocation6_spill] sm:$0xff]  ;;  %v5393_v23 = vld [vmem:[#allocation24_spill] sm:$0xff]  ;;  %v5400_v27 = vld [vmem:[#allocation31_spill] sm:$0xff] }
 0x4fc   : > { %2433 = vmatprep.subr.bf16.mxu0 %v2406_v13  ;;  %2474 = vmatprep.subr.bf16.mxu1 %v2408_v15  ;;  %v2397_v32 = vpack.c.bf16 %v2369_v19, %v2365_v52  ;;  %v2399_v48 = vpack.c.bf16 %v2371_v21, %v2367_v8  ;;  %v3788_v15 = vld [vmem:[%s5257_s14] sm:$0xff]   ;;  %v5399_v50 = vld [vmem:[#allocation30_spill] sm:$0xff]  ;;  %v5402_v17 = vld [vmem:[#allocation33_spill] sm:$0xff] }
 0x4fd   : > { %v5401_v16 = vld [vmem:[#allocation32_spill] sm:$0xff]  ;;  %v5403_v51 = vld [vmem:[#allocation34_spill] sm:$0xff]  ;;  %v5404_v44 = vld [vmem:[#allocation35_spill] sm:$0xff] }
 0x4fe   : > { %v5405_v19 = vld [vmem:[#allocation36_spill] sm:$0xff]  ;;  %v5406_v21 = vld [vmem:[#allocation37_spill] sm:$0xff] }
 0x4ff   : > { %2434 = vmatpush1.bf16.msra.mxu0 %v2405_v34  ;;  %2475 = vmatpush1.bf16.msra.mxu1 %v2407_v25  ;;  %v5394_v34 = vld [vmem:[#allocation25_spill] sm:$0xff]  ;;  %v5395_v25 = vld [vmem:[#allocation26_spill] sm:$0xff] }
 0x500   : > { %2435 = vmatprep.subr.bf16.mxu0 %v2402_v57  ;;  %2476 = vmatprep.subr.bf16.mxu1 %v2404_v62  ;;  %v5398_v57 = vld [vmem:[#allocation29_spill] sm:$0xff]  ;;  %v3790_v62 = vld [vmem:[%s5257_s14 + $0x10] sm:$0xff]  }
 0x501   : > { %v5410_v52 = vld [vmem:[#allocation41_spill] sm:$0xff] }
 0x502   : > { %v3794_v8 = vld [vmem:[%s5258_s15 + $0x4] ss:$8 sps:$4 sm:$0xff]  }
 0x503   : > { %2436 = vmatpush1.bf16.msra.mxu0 %v2401_v10  ;;  %2477 = vmatpush1.bf16.msra.mxu1 %v2403_v12  ;;  %v3791_v10 = vld [vmem:[%s5257_s14 + $0x18] sm:$0xff]   ;;  %v5407_v12 = vld [vmem:[#allocation38_spill] sm:$0xff] }
 0x504   : > { %2437 = vmatprep.subr.bf16.mxu0 %v2398_v2  ;;  %2478 = vmatprep.subr.bf16.mxu1 %v2400_v30  ;;  %v5408_v2 = vld [vmem:[#allocation39_spill] sm:$0xff]  ;;  %v5409_v30 = vld [vmem:[#allocation40_spill] sm:$0xff] }
 0x507   : > { %2438 = vmatpush1.bf16.msra.mxu0 %v2397_v32  ;;  %2479 = vmatpush1.bf16.msra.mxu1 %v2399_v48  ;;  %v5411_v32 = vld [vmem:[#allocation42_spill] sm:$0xff]  ;;  %v5412_v48 = vld [vmem:[#allocation43_spill] sm:$0xff] }
 0x50a   : > { %3626 = vmatmul.mubr.msk.bf16.vlgmr.msra.gmra.mxu0 %vm1296_vm3, %v2413_v26  ;;  %3627 = vmatmul.mubr.msk.bf16.vlgmr.msra.gmra.mxu1 %vm1296_vm3, %v2413_v26  ;;  %v5413_v26 = vld [vmem:[#allocation4_spill] sm:$0xff] }
 0x50b   : > { %2605 = vmatprep.mubr.bf16.mxu0 %v5342_v29  ;;  %2678 = vmatprep.mubr.bf16.mxu1 %v5342_v29 }
 0x5ca   : > { %v2457_v11 = vpop.f32.mrf.mxu0  ;;  %v2498_v9 = vpop.f32.mrf.mxu1 }
 0x5cb   : > { %v2458_v55 = vadd.f32 %v2457_v11, %v2418_v14  ;;  %v2499_v53 = vadd.f32 %v2498_v9, %v2418_v14  ;;  %v5415_v11 = vld [vmem:[#allocation7_spill] sm:$0xff]  ;;  %v5416_v9 = vld [vmem:[#allocation8_spill] sm:$0xff] }
 0x5cc   : > { %v2459_v22 = vpop.f32.mrf.mxu0  ;;  %v2500_v41 = vpop.f32.mrf.mxu1 }
 0x5cd   : > { %v2505_v37 = vadd.f32 %v2458_v55, %v4438_v59  ;;  %v2507_v46 = vadd.f32 %v2499_v53, %v5381_v28  ;;  %v2460_v56 = vadd.f32 %v2459_v22, %v2418_v14  ;;  %v2501_v61 = vadd.f32 %v2500_v41, %v2418_v14  ;;  %v5414_v14 = vld [vmem:[#allocation5_spill] sm:$0xff]  ;;  %v5418_v53 = vld [vmem:[#allocation10_spill] sm:$0xff]  ;;  %v5419_v41 = vld [vmem:[#allocation11_spill] sm:$0xff] }
 0x5ce   : > { %v2461_v33 = vpop.f32.mrf.mxu0  ;;  %v2502_v31 = vpop.f32.mrf.mxu1  ;;  %v5417_v55 = vld [vmem:[#allocation9_spill] sm:$0xff]  ;;  %v3795_v28 = vld [vmem:[%s5258_s15 + $0x14] ss:$8 sps:$4 sm:$0xff]  }
 0x5cf   : > { %v2506_v7 = vadd.f32 %v2460_v56, %v5382_v18  ;;  %v2508_v4 = vadd.f32 %v2501_v61, %v5383_v1  ;;  %v2517_v43 = vpack.c.bf16 %v2505_v37, %v2505_v37  ;;  %v2519_v40 = vpack.c.bf16 %v2507_v46, %v2507_v46  ;;  %v3792_v22 = vld [vmem:[%s5258_s15] ss:$8 sps:$4 sm:$0xff]   ;;  %v3797_v46 = vld [vmem:[%s5258_s15 + $0x10] ss:$8 sps:$4 sm:$0xff]   ;;  %v3798_v56 = vld [vmem:[%s5258_s15 + $0x24] ss:$8 sps:$4 sm:$0xff]  }
 0x5d0   : > { %v2462_v60 = vpop.f32.mrf.mxu0  ;;  %v2503_v58 = vpop.f32.mrf.mxu1  ;;  %v5420_v37 = vld [vmem:[#allocation12_spill] sm:$0xff]  ;;  %v3801_v33 = vld [vmem:[%s5258_s15 + $0x34] ss:$8 sps:$4 sm:$0xff]   ;;  %v3803_v31 = vld [vmem:[%s5258_s15 + $0x30] ss:$8 sps:$4 sm:$0xff]  }
 0x5d1   : > { %v2518_v0 = vpack.c.bf16 %v2506_v7, %v2506_v7  ;;  %v2520_v5 = vpack.c.bf16 %v2508_v4, %v2508_v4  ;;  %v2562_v36 = vand.u32 %v2517_v43, %v5384_v38  ;;  %v2568_v13 = vand.u32 %v2519_v40, %v5384_v38  ;;  %v3800_v61 = vld [vmem:[%s5258_s15 + $0x20] ss:$8 sps:$4 sm:$0xff]  }
 0x5d3   : > { %v2565_v45 = vand.u32 %v2518_v0, %v5384_v38  ;;  %v2571_v59 = vand.u32 %v2520_v5, %v5384_v38 }
 0x5d5   : > { %2587 = vmatprep.subr.bf16.mxu0 %v2565_v45  ;;  %2660 = vmatprep.subr.bf16.mxu1 %v2571_v59 }
 0x5d6   : > { %2588 = vmatpush1.bf16.msra.mxu0 %v2562_v36  ;;  %2661 = vmatpush1.bf16.msra.mxu1 %v2568_v13 }
 0x5d7   : > { %2767 = vmatprep.subr.bf16.mxu0 %v5385_v47  ;;  %2840 = vmatprep.subr.bf16.mxu1 %v5386_v24 }
 0x5d9   : > { %3632 = vmatmul.mubr.msk.bf16.vlgmr.msra.gmra.mxu0 %vm997_vm0, %v3788_v15  ;;  %3636 = vmatmul.mubr.msk.bf16.vlgmr.msra.gmra.mxu1 %vm997_vm0, %v3788_v15 }
 0x5da   : > { %2768 = vmatpush1.bf16.msra.mxu0 %v5387_v42  ;;  %2841 = vmatpush1.bf16.msra.mxu1 %v5388_v63 }
 0x5db   : > { %2769 = vmatprep.subr.bf16.mxu0 %v5389_v49  ;;  %2842 = vmatprep.subr.bf16.mxu1 %v5390_v35 }
 0x5dc   : > { %2615 = vmatprep.mubr.bf16.mxu0 %v5342_v29  ;;  %2688 = vmatprep.mubr.bf16.mxu1 %v5342_v29 }
 0x5de   : > { %2770 = vmatpush1.bf16.msra.mxu0 %v5391_v39  ;;  %2843 = vmatpush1.bf16.msra.mxu1 %v5392_v6  ;;  %v5019_v6 = vpop.permute.xlu0 %2953 }
 0x5df   : > { %2771 = vmatprep.subr.bf16.mxu0 %v5393_v23  ;;  %2844 = vmatprep.subr.bf16.mxu1 %v5394_v34 }
 0x5e1   : > { %3633 = vmatmul.mubr.msk.bf16.gmra.mxu0 %vm997_vm0, %v3789_v54  ;;  %3637 = vmatmul.mubr.msk.bf16.gmra.mxu1 %vm997_vm0, %v3789_v54 }
 0x5e2   : > { %2772 = vmatpush1.bf16.msra.mxu0 %v5395_v25  ;;  %2845 = vmatpush1.bf16.msra.mxu1 %v5396_v20  ;;  %v5025_v25 = vpop.permute.xlu1 %2958 }
 0x5e3   : > { %2773 = vmatprep.subr.bf16.mxu0 %v5397_v3  ;;  %2846 = vmatprep.subr.bf16.mxu1 %v5398_v57  ;;  %v5031_v57 = vpop.permute.xlu0 %2943 }
 0x5e4   : > { %2625 = vmatprep.mubr.bf16.mxu0 %v5342_v29  ;;  %2698 = vmatprep.mubr.bf16.mxu1 %v5342_v29 }
 0x5e6   : > { %2774 = vmatpush1.bf16.msra.mxu0 %v5399_v50  ;;  %2847 = vmatpush1.bf16.msra.mxu1 %v5400_v27  ;;  %v5037_v27 = vpop.permute.xlu1 %2948 }
 0x5e7   : > { %2775 = vmatprep.subr.bf16.mxu0 %v5401_v16  ;;  %2848 = vmatprep.subr.bf16.mxu1 %v5402_v17 }
 0x5e9   : > { %3634 = vmatmul.mubr.msk.bf16.gmra.mxu0 %vm997_vm0, %v3790_v62  ;;  %3638 = vmatmul.mubr.msk.bf16.gmra.mxu1 %vm997_vm0, %v3790_v62 }
 0x5ea   : > { %2776 = vmatpush1.bf16.msra.mxu0 %v5403_v51  ;;  %2849 = vmatpush1.bf16.msra.mxu1 %v5404_v44  ;;  %v5043_v51 = vpop.permute.xlu0 %2933 }
 0x5eb   : > { %2777 = vmatprep.subr.bf16.mxu0 %v5405_v19  ;;  %2850 = vmatprep.subr.bf16.mxu1 %v5406_v21  ;;  %v5045_v21 = vpop.permute.xlu1 %2938 }
 0x5ec   : > { %2635 = vmatprep.mubr.bf16.mxu0 %v5342_v29  ;;  %2708 = vmatprep.mubr.bf16.mxu1 %v5342_v29 }
 0x5ee   : > { %2778 = vmatpush1.bf16.msra.mxu0 %v5407_v12  ;;  %2851 = vmatpush1.bf16.msra.mxu1 %v5408_v2 }
 0x5ef   : > { %2779 = vmatprep.subr.bf16.mxu0 %v5409_v30  ;;  %2852 = vmatprep.subr.bf16.mxu1 %v5410_v52 }
 0x5f1   : > { %3635 = vmatmul.mubr.msk.bf16.gmra.mxu0 %vm997_vm0, %v3791_v10  ;;  %3639 = vmatmul.mubr.msk.bf16.gmra.mxu1 %vm997_vm0, %v3791_v10 }
 0x5f2   : > { %2780 = vmatpush1.bf16.msra.mxu0 %v5411_v32  ;;  %2853 = vmatpush1.bf16.msra.mxu1 %v5412_v48 }
 0x5f3   : > { %2781 = vmatprep.subr.bf16.mxu0 %v5413_v26  ;;  %2854 = vmatprep.subr.bf16.mxu1 %v5414_v14  ;;  %v2924_v26 = vpop.permute.xlu0 %2923 }
 0x5f4   : > { %3648 = vmatprep.mubr.msk.bf16.mxu0 %vm997_vm0, %v3794_v8  ;;  %3652 = vmatprep.mubr.msk.bf16.mxu1 %vm997_vm0, %v3794_v8 }
 0x5f6   : > { %2782 = vmatpush1.bf16.msra.mxu0 %v5415_v11  ;;  %2855 = vmatpush1.bf16.msra.mxu1 %v5416_v9 }
 0x5f7   : > { %2797 = vmatprep.subr.bf16.mxu0 %v5417_v55  ;;  %2870 = vmatprep.subr.bf16.mxu1 %v5418_v53 }
 0x5fa   : > { %2798 = vmatpush2.bf16.msra.mxu0 %v5419_v41  ;;  %2871 = vmatpush2.bf16.msra.mxu1 %v5420_v37  ;;  %v2929_v41 = vpop.permute.xlu1 %2928 }
 0x5fd   : > { %2800 = vmatmul.mubr.bf16.vlgmr.msra.gmra.mxu0 %v3792_v22  ;;  %2873 = vmatmul.mubr.bf16.vlgmr.msra.gmra.mxu1 %v3792_v22 }
 0x5fe   : > { %3649 = vmatprep.mubr.msk.bf16.mxu0 %vm997_vm0, %v3795_v28  ;;  %3653 = vmatprep.mubr.msk.bf16.mxu1 %vm997_vm0, %v3795_v28 }
 0x605   : > { %2810 = vmatmul.mubr.bf16.gmra.mxu0 %v3797_v46  ;;  %2883 = vmatmul.mubr.bf16.gmra.mxu1 %v3797_v46 }
 0x606   : > { %3650 = vmatprep.mubr.msk.bf16.mxu0 %vm997_vm0, %v3798_v56  ;;  %3654 = vmatprep.mubr.msk.bf16.mxu1 %vm997_vm0, %v3798_v56 }
 0x60d   : > { %2820 = vmatmul.mubr.bf16.gmra.mxu0 %v3800_v61  ;;  %2893 = vmatmul.mubr.bf16.gmra.mxu1 %v3800_v61 }
 0x60e   : > { %3651 = vmatprep.mubr.msk.bf16.mxu0 %vm997_vm0, %v3801_v33  ;;  %3655 = vmatprep.mubr.msk.bf16.mxu1 %vm997_vm0, %v3801_v33 }
 0x615   : > { %2830 = vmatmul.mubr.bf16.gmra.mxu0 %v3803_v31  ;;  %2903 = vmatmul.mubr.bf16.gmra.mxu1 %v3803_v31 }
 0x616   : > { %3161 = vmatprep.mubr.bf16.mxu0 %v5342_v29  ;;  %3234 = vmatprep.mubr.bf16.mxu1 %v5342_v29 }
 0x699   : > { %v2607_v18 = vpop.f32.mrf.mxu0  ;;  %v2680_v7 = vpop.f32.mrf.mxu1 }
 0x69b   : > { %v2609_v1 = vpop.f32.mrf.mxu0  ;;  %v2682_v4 = vpop.f32.mrf.mxu1 }
 0x69d   : > { %v2611_v43 = vpop.f32.mrf.mxu0  ;;  %v2684_v40 = vpop.f32.mrf.mxu1 }
 0x69f   : > { %v2613_v60 = vpop.f32.mrf.mxu0  ;;  %v2686_v58 = vpop.f32.mrf.mxu1 }
 0x6a1   : > { %v4987_v0 = vpop.f32.mrf.mxu0  ;;  %v4989_v5 = vpop.f32.mrf.mxu1 }
 0x6a3   : > { %v4991_v38 = vpop.f32.mrf.mxu0  ;;  %v4993_v45 = vpop.f32.mrf.mxu1 }
 0x6a5   : > { %v4995_v59 = vpop.f32.mrf.mxu0  ;;  %v4997_v36 = vpop.f32.mrf.mxu1 }
 0x6a7   : > { %v4999_v13 = vpop.f32.mrf.mxu0  ;;  %v5001_v15 = vpop.f32.mrf.mxu1 }
 0x6a9   : > { %v5003_v47 = vpop.f32.mrf.mxu0  ;;  %v5005_v24 = vpop.f32.mrf.mxu1 }
 0x6ab   : > { %v5007_v42 = vpop.f32.mrf.mxu0  ;;  %v5009_v63 = vpop.f32.mrf.mxu1 }
 0x6ad   : > { %v5011_v49 = vpop.f32.mrf.mxu0  ;;  %v5013_v35 = vpop.f32.mrf.mxu1 }
 0x6af   : > { %v5015_v54 = vpop.f32.mrf.mxu0  ;;  %v5017_v39 = vpop.f32.mrf.mxu1 }
 0x6b1   : > { %v5021_v23 = vpop.f32.mrf.mxu0  ;;  %v5023_v34 = vpop.f32.mrf.mxu1 }
 0x6b3   : > { %v5027_v20 = vpop.f32.mrf.mxu0  ;;  %v5029_v3 = vpop.f32.mrf.mxu1 }
 0x6b5   : > { %v5033_v62 = vpop.f32.mrf.mxu0  ;;  %v5035_v50 = vpop.f32.mrf.mxu1 }
 0x6b7   : > { %v5039_v16 = vpop.f32.mrf.mxu0  ;;  %v5041_v17 = vpop.f32.mrf.mxu1 }
 0x6bd   : > { %v2801_v44 = vpop.f32.mrf.mxu0  ;;  %v2874_v19 = vpop.f32.mrf.mxu1 }
 0x6be   : > { %v2802_v10 = vadd.f32 %v2801_v44, %v2607_v18  ;;  %v2875_v12 = vadd.f32 %v2874_v19, %v2680_v7 }
 0x6bf   : > { %v2803_v2 = vpop.f32.mrf.mxu0  ;;  %v2876_v30 = vpop.f32.mrf.mxu1 }
 0x6c0   : > { %v2804_v52 = vadd.f32 %v2803_v2, %v2609_v1  ;;  %v2877_v8 = vadd.f32 %v2876_v30, %v2682_v4  ;;  %v2961_v14 = vadd.f32 %v2924_v26, %v2802_v10  ;;  %v2963_v11 = vadd.f32 %v2924_v26, %v2875_v12 }
 0x6c1   : > { %v2805_v32 = vpop.f32.mrf.mxu0  ;;  %v2878_v48 = vpop.f32.mrf.mxu1 }
 0x6c2   : > { %v2806_v9 = vadd.f32 %v2805_v32, %v2611_v43  ;;  %v2879_v55 = vadd.f32 %v2878_v48, %v2684_v40  ;;  %v2962_v46 = vadd.f32 %v2924_v26, %v2804_v52  ;;  %v2964_v56 = vadd.f32 %v2924_v26, %v2877_v8 }
 0x6c3   : > { %v2807_v53 = vpop.f32.mrf.mxu0  ;;  %v2880_v22 = vpop.f32.mrf.mxu1  ;;  %v2993_v4 = vmax.f32 %v2961_v14, 0.0  ;;  %v2995_v44 = vmax.f32 %v2963_v11, 0.0 }
 0x6c4   : > { %v2808_v37 = vadd.f32 %v2807_v53, %v2613_v60  ;;  %v2881_v28 = vadd.f32 %v2880_v22, %v2686_v58  ;;  %v2965_v61 = vadd.f32 %v2929_v41, %v2806_v9  ;;  %v2967_v33 = vadd.f32 %v2929_v41, %v2879_v55 }
 0x6c5   : > { %v2811_v31 = vpop.f32.mrf.mxu0  ;;  %v2884_v18 = vpop.f32.mrf.mxu1  ;;  %v2994_v30 = vmax.f32 %v2962_v46, 0.0  ;;  %v2996_v32 = vmax.f32 %v2964_v56, 0.0 }
 0x6c6   : > { %v2966_v7 = vadd.f32 %v2929_v41, %v2808_v37  ;;  %v2968_v1 = vadd.f32 %v2929_v41, %v2881_v28  ;;  %v2997_v19 = vmax.f32 %v2965_v61, 0.0  ;;  %v2999_v10 = vmax.f32 %v2967_v33, 0.0 }
 0x6c7   : > { %v2813_v12 = vpop.f32.mrf.mxu0  ;;  %v2886_v43 = vpop.f32.mrf.mxu1 }
 0x6c8   : > { %v2998_v40 = vmax.f32 %v2966_v7, 0.0  ;;  %v3000_v2 = vmax.f32 %v2968_v1, 0.0  ;;  %v5047_v60 = vpack.c.bf16 %v2997_v19, %v2993_v4  ;;  %v5049_v58 = vpack.c.bf16 %v2999_v10, %v2995_v44 }
 0x6c9   : > { %v2815_v52 = vpop.f32.mrf.mxu0  ;;  %v2888_v8 = vpop.f32.mrf.mxu1  ;;  %v2814_v28 = vadd.f32 %v2813_v12, %v4991_v38  ;;  %v2887_v46 = vadd.f32 %v2886_v43, %v4993_v45  ;;  %v5062_v44 = vadd.f32 %v2811_v31, %v4987_v0  ;;  %v5065_v19 = vadd.f32 %v2884_v18, %v4989_v5 }
 0x6ca   : > { %v5051_v9 = vpack.c.bf16 %v2998_v40, %v2994_v30  ;;  %v5053_v14 = vpack.c.bf16 %v3000_v2, %v2996_v32  ;;  %v2816_v56 = vadd.f32 %v2815_v52, %v4995_v59  ;;  %v2889_v61 = vadd.f32 %v2888_v8, %v4997_v36 }
 0x6cb   : > { %v2817_v48 = vpop.f32.mrf.mxu0  ;;  %v2890_v26 = vpop.f32.mrf.mxu1  ;;  %v5068_v45 = vadd.f32 %v5043_v51, %v2814_v28  ;;  %v5071_v59 = vadd.f32 %v5043_v51, %v2887_v46 }
 0x6cc   : > { %v2818_v33 = vadd.f32 %v2817_v48, %v4999_v13  ;;  %v2891_v7 = vadd.f32 %v2890_v26, %v5001_v15  ;;  %v5074_v36 = vadd.f32 %v5045_v21, %v2816_v56  ;;  %v5077_v13 = vadd.f32 %v5045_v21, %v2889_v61 }
 0x6cd   : > { %v2821_v11 = vpop.f32.mrf.mxu0  ;;  %v2894_v55 = vpop.f32.mrf.mxu1 }
 0x6ce   : > { %v5080_v0 = vadd.f32 %v5045_v21, %v2818_v33  ;;  %v5083_v5 = vadd.f32 %v5045_v21, %v2891_v7  ;;  %v2822_v43 = vadd.f32 %v2821_v11, %v5003_v47  ;;  %v2895_v40 = vadd.f32 %v2894_v55, %v5005_v24 }
 0x6cf   : > { %v2823_v53 = vpop.f32.mrf.mxu0  ;;  %v2896_v22 = vpop.f32.mrf.mxu1 }
 0x6d0   : > { %v2824_v2 = vadd.f32 %v2823_v53, %v5007_v42  ;;  %v2897_v30 = vadd.f32 %v2896_v22, %v5009_v63 }
 0x6d1   : > { %v2825_v41 = vpop.f32.mrf.mxu0  ;;  %v2898_v37 = vpop.f32.mrf.mxu1 }
 0x6d2   : > { %v2826_v48 = vadd.f32 %v2825_v41, %v5011_v49  ;;  %v2899_v47 = vadd.f32 %v2898_v37, %v5013_v35  ;;  %v2980_v55 = vadd.f32 %v5031_v57, %v2897_v30 }
 0x6d3   : > { %v2827_v1 = vpop.f32.mrf.mxu0  ;;  %v2900_v4 = vpop.f32.mrf.mxu1 }
 0x6d4   : > { %v2828_v15 = vadd.f32 %v2827_v1, %v5015_v54  ;;  %v2901_v31 = vadd.f32 %v2900_v4, %v5017_v39  ;;  %v2981_v41 = vadd.f32 %v5037_v27, %v2826_v48  ;;  %v2983_v37 = vadd.f32 %v5037_v27, %v2899_v47 }
 0x6d5   : > { %v2831_v10 = vpop.f32.mrf.mxu0  ;;  %v2904_v38 = vpop.f32.mrf.mxu1  ;;  %v3002_v48 = vmax.f32 %v5068_v45, 0.0  ;;  %v3007_v47 = vmax.f32 %v5077_v13, 0.0 }
 0x6d6   : > { %v2832_v32 = vadd.f32 %v2831_v10, %v5021_v23  ;;  %v2905_v52 = vadd.f32 %v2904_v38, %v5023_v34  ;;  %v2982_v63 = vadd.f32 %v5037_v27, %v2828_v15  ;;  %v2984_v23 = vadd.f32 %v5037_v27, %v2901_v31 }
 0x6d7   : > { %v2833_v18 = vpop.f32.mrf.mxu0  ;;  %v2906_v12 = vpop.f32.mrf.mxu1  ;;  %v2977_v10 = vadd.f32 %v5031_v57, %v2822_v43  ;;  %v3012_v27 = vmax.f32 %v2980_v55, 0.0 }
 0x6d8   : > { %v2834_v21 = vadd.f32 %v2833_v18, %v5027_v20  ;;  %v2907_v54 = vadd.f32 %v2906_v12, %v5029_v3  ;;  %v2985_v53 = vadd.f32 %v5019_v6, %v2832_v32  ;;  %v2987_v22 = vadd.f32 %v5019_v6, %v2905_v52 }
 0x6d9   : > { %v2835_v8 = vpop.f32.mrf.mxu0  ;;  %v2908_v39 = vpop.f32.mrf.mxu1  ;;  %v3014_v56 = vmax.f32 %v2982_v63, 0.0  ;;  %v3006_v52 = vmax.f32 %v5080_v0, 0.0  ;;  %v3004_v0 = vmax.f32 %v5071_v59, 0.0  ;;  %v3804_v59 = vld [vmem:[%s5260_s17] sm:$0xff]  }
 0x6da   : > { %v2836_v24 = vadd.f32 %v2835_v8, %v5033_v62  ;;  %v2909_v42 = vadd.f32 %v2908_v39, %v5035_v50  ;;  %v2986_v34 = vadd.f32 %v5019_v6, %v2834_v21  ;;  %v2988_v20 = vadd.f32 %v5019_v6, %v2907_v54 }
 0x6db   : > { %v2837_v26 = vpop.f32.mrf.mxu0  ;;  %v2910_v3 = vpop.f32.mrf.mxu1  ;;  %v2978_v50 = vadd.f32 %v5031_v57, %v2824_v2  ;;  %v2979_v6 = vadd.f32 %v5031_v57, %v2895_v40  ;;  %v3017_v38 = vmax.f32 %v2985_v53, 0.0  ;;  %v3019_v15 = vmax.f32 %v2987_v22, 0.0 }
 0x6dc   : > { %v2989_v11 = vadd.f32 %v5025_v25, %v2836_v24  ;;  %v2991_v49 = vadd.f32 %v5025_v25, %v2909_v42  ;;  %v2838_v35 = vadd.f32 %v2837_v26, %v5039_v16  ;;  %v2911_v62 = vadd.f32 %v2910_v3, %v5041_v17 }
 0x6dd   : > { %v3016_v16 = vmax.f32 %v2984_v23, 0.0  ;;  %v3018_v33 = vmax.f32 %v2986_v34, 0.0  ;;  %v3020_v7 = vmax.f32 %v2988_v20, 0.0  ;;  %v3010_v31 = vmax.f32 %v2978_v50, 0.0 }
 0x6de   : > { %v2990_v28 = vadd.f32 %v5025_v25, %v2838_v35  ;;  %v2992_v46 = vadd.f32 %v5025_v25, %v2911_v62  ;;  %v3021_v61 = vmax.f32 %v2989_v11, 0.0  ;;  %v3023_v17 = vmax.f32 %v2991_v49, 0.0  ;;  %v3090_v49 = vpop.permute.xlu0 %3089  ;;  %v3095_v35 = vpop.permute.xlu1 %3094 }
 0x6df   : > { %v3013_v2 = vmax.f32 %v2981_v41, 0.0  ;;  %v3015_v25 = vmax.f32 %v2983_v37, 0.0  ;;  %v3008_v21 = vmax.f32 %v5083_v5, 0.0  ;;  %v3034_v54 = vpack.c.bf16 %v3014_v56, %v3010_v31 }
 0x6e0   : > { %v3022_v1 = vmax.f32 %v2990_v28, 0.0  ;;  %v3024_v4 = vmax.f32 %v2992_v46, 0.0  ;;  %v3037_v30 = vpack.c.bf16 %v3021_v61, %v3017_v38  ;;  %v3039_v32 = vpack.c.bf16 %v3023_v17, %v3019_v15 }
 0x6e1   : > { %v3036_v43 = vpack.c.bf16 %v3016_v16, %v3012_v27  ;;  %v2969_v57 = vadd.f32 %v5043_v51, %v5062_v44  ;;  %v2971_v40 = vadd.f32 %v5043_v51, %v5065_v19  ;;  %v3009_v8 = vmax.f32 %v2977_v10, 0.0 }
 0x6e2   : > { %v3038_v18 = vpack.c.bf16 %v3022_v1, %v3018_v33  ;;  %v3040_v12 = vpack.c.bf16 %v3024_v4, %v3020_v7  ;;  %v3011_v39 = vmax.f32 %v2979_v6, 0.0  ;;  %v3005_v5 = vmax.f32 %v5074_v36, 0.0  ;;  %v3080_v41 = vpop.permute.xlu0 %3079  ;;  %v3085_v37 = vpop.permute.xlu1 %3084 }
 0x6e3   : > { %v3033_v24 = vpack.c.bf16 %v3013_v2, %v3009_v8  ;;  %v3030_v44 = vpack.c.bf16 %v3006_v52, %v3002_v48  ;;  %v3032_v63 = vpack.c.bf16 %v3008_v21, %v3004_v0  ;;  %v3001_v23 = vmax.f32 %v2969_v57, 0.0 }
 0x6e4   : > { %3137 = vmatprep.subr.bf16.mxu0 %v3038_v18  ;;  %3210 = vmatprep.subr.bf16.mxu1 %v3040_v12  ;;  %v3035_v42 = vpack.c.bf16 %v3015_v25, %v3011_v39  ;;  %v3003_v51 = vmax.f32 %v2971_v40, 0.0 }
 0x6e5   : > { %3138 = vmatpush1.bf16.msra.mxu0 %v3037_v30  ;;  %3211 = vmatpush1.bf16.msra.mxu1 %v3039_v32  ;;  %v3029_v19 = vpack.c.bf16 %v3005_v5, %v3001_v23 }
 0x6e6   : > { %3139 = vmatprep.subr.bf16.mxu0 %v3034_v54  ;;  %3212 = vmatprep.subr.bf16.mxu1 %v3036_v43  ;;  %v3031_v45 = vpack.c.bf16 %v3007_v47, %v3003_v51  ;;  %v5171_v33 = vpop.permute.xlu0 %3069  ;;  %v3075_v7 = vpop.permute.xlu1 %3074 }
 0x6e9   : > { %3140 = vmatpush1.bf16.msra.mxu0 %v3033_v24  ;;  %3213 = vmatpush1.bf16.msra.mxu1 %v3035_v42 }
 0x6ea   : > { %3141 = vmatprep.subr.bf16.mxu0 %v3030_v44  ;;  %3214 = vmatprep.subr.bf16.mxu1 %v3032_v63  ;;  %v5173_v31 = vpop.permute.xlu0 %3059  ;;  %v5175_v27 = vpop.permute.xlu1 %3064 }
 0x6ed   : > { %3142 = vmatpush1.bf16.msra.mxu0 %v3029_v19  ;;  %3215 = vmatpush1.bf16.msra.mxu1 %v3031_v45 }
 0x6ee   : > { %3143 = vmatprep.subr.bf16.mxu0 %v5051_v9  ;;  %3216 = vmatprep.subr.bf16.mxu1 %v5053_v14  ;;  %v3805_v9 = vld [vmem:[%s5260_s17 + $0x8] sm:$0xff]  }
 0x6f1   : > { %3144 = vmatpush1.bf16.msra.mxu0 %v5047_v60  ;;  %3217 = vmatpush1.bf16.msra.mxu1 %v5049_v58  ;;  %v3806_v60 = vld [vmem:[%s5260_s17 + $0x10] sm:$0xff]   ;;  %v3807_v58 = vld [vmem:[%s5260_s17 + $0x18] sm:$0xff]  }
 0x6f4   : > { %3660 = vmatmul.mubr.msk.bf16.vlgmr.msra.gmra.mxu0 %vm1296_vm3, %v3804_v59  ;;  %3664 = vmatmul.mubr.msk.bf16.vlgmr.msra.gmra.mxu1 %vm1296_vm3, %v3804_v59 }
 0x6f5   : > { %3171 = vmatprep.mubr.bf16.mxu0 %v5342_v29  ;;  %3244 = vmatprep.mubr.bf16.mxu1 %v5342_v29 }
 0x6fc   : > { %3661 = vmatmul.mubr.msk.bf16.gmra.mxu0 %vm1296_vm3, %v3805_v9  ;;  %3665 = vmatmul.mubr.msk.bf16.gmra.mxu1 %vm1296_vm3, %v3805_v9 }
 0x6fd   : > { %3181 = vmatprep.mubr.bf16.mxu0 %v5342_v29  ;;  %3254 = vmatprep.mubr.bf16.mxu1 %v5342_v29 }
 0x704   : > { %3662 = vmatmul.mubr.msk.bf16.gmra.mxu0 %vm1296_vm3, %v3806_v60  ;;  %3666 = vmatmul.mubr.msk.bf16.gmra.mxu1 %vm1296_vm3, %v3806_v60 }
 0x705   : > { %3191 = vmatprep.mubr.bf16.mxu0 %v5342_v29  ;;  %3264 = vmatprep.mubr.bf16.mxu1 %v5342_v29 }
 0x70c   : > { %3663 = vmatmul.mubr.msk.bf16.gmra.mxu0 %vm1296_vm3, %v3807_v58  ;;  %3667 = vmatmul.mubr.msk.bf16.gmra.mxu1 %vm1296_vm3, %v3807_v58 }
 0x70d   : > { %3365 = vmatprep.mubr.bf16.mxu0 %v5342_v29  ;;  %3406 = vmatprep.mubr.bf16.mxu1 %v5342_v29 }
 0x7b4   : > { %v5159_v14 = vpop.f32.mrf.mxu0  ;;  %v5161_v36 = vpop.f32.mrf.mxu1 }
 0x7b6   : > { %v3165_v13 = vpop.f32.mrf.mxu0  ;;  %v3238_v34 = vpop.f32.mrf.mxu1 }
 0x7b7   : > { %v5178_v18 = vadd.f32 %v3165_v13, %v5173_v31  ;;  %v5181_v12 = vadd.f32 %v3238_v34, %v5173_v31 }
 0x7b8   : > { %v5163_v20 = vpop.f32.mrf.mxu0  ;;  %v5165_v26 = vpop.f32.mrf.mxu1 }
 0x7ba   : > { %v3169_v3 = vpop.f32.mrf.mxu0  ;;  %v3242_v11 = vpop.f32.mrf.mxu1 }
 0x7bb   : > { %v5184_v2 = vadd.f32 %v3169_v3, %v5175_v27  ;;  %v5187_v25 = vadd.f32 %v3242_v11, %v5175_v27 }
 0x7bc   : > { %v5167_v62 = vpop.f32.mrf.mxu0  ;;  %v5169_v50 = vpop.f32.mrf.mxu1 }
 0x7be   : > { %v3175_v55 = vpop.f32.mrf.mxu0  ;;  %v3248_v29 = vpop.f32.mrf.mxu1 }
 0x7bf   : > { %v5190_v52 = vadd.f32 %v3175_v55, %v5171_v33  ;;  %v5193_v21 = vadd.f32 %v3248_v29, %v5171_v33 }
 0x7c0   : > { %v3177_v53 = vpop.f32.mrf.mxu0  ;;  %v3250_v22 = vpop.f32.mrf.mxu1 }
 0x7c1   : > { %v5195_v54 = vadd.f32 %v3177_v53, %v3075_v7  ;;  %v5197_v43 = vadd.f32 %v3250_v22, %v3075_v7 }
 0x7c2   : > { %v3179_v28 = vpop.f32.mrf.mxu0  ;;  %v3252_v46 = vpop.f32.mrf.mxu1 }
 0x7c3   : > { %v5199_v57 = vadd.f32 %v3179_v28, %v3075_v7  ;;  %v5201_v40 = vadd.f32 %v3252_v46, %v3075_v7 }
 0x7c4   : > { %v3183_v56 = vpop.f32.mrf.mxu0  ;;  %v3256_v16 = vpop.f32.mrf.mxu1 }
 0x7c5   : > { %v3184_v28 = vadd.f32 %v3183_v56, %v3080_v41  ;;  %v3257_v46 = vadd.f32 %v3256_v16, %v3080_v41  ;;  %v3247_v56 = vadd.f32 %v5169_v50, %v5171_v33  ;;  %v3289_v50 = vmax.f32 %v5197_v43, 0.0 }
 0x7c6   : > { %v3185_v61 = vpop.f32.mrf.mxu0  ;;  %v3258_v17 = vpop.f32.mrf.mxu1  ;;  %v3278_v43 = vmax.f32 %v5181_v12, 0.0 }
 0x7c7   : > { %v3186_v44 = vadd.f32 %v3185_v61, %v3080_v41  ;;  %v3259_v63 = vadd.f32 %v3258_v17, %v3080_v41  ;;  %v3174_v41 = vadd.f32 %v5167_v62, %v5171_v33  ;;  %v3291_v16 = vmax.f32 %v3184_v28, 0.0 }
 0x7c8   : > { %v3187_v1 = vpop.f32.mrf.mxu0  ;;  %v3260_v4 = vpop.f32.mrf.mxu1  ;;  %v3287_v62 = vmax.f32 %v5195_v54, 0.0  ;;  %v3276_v54 = vmax.f32 %v5178_v18, 0.0  ;;  %v3323_v18 = vld [vmem:[%s5262_s19] sm:$0x3] }
 0x7c9   : > { %v3188_v59 = vadd.f32 %v3187_v1, %v3085_v37  ;;  %v3261_v9 = vadd.f32 %v3260_v4, %v3085_v37  ;;  %v3292_v7 = vmax.f32 %v3186_v44, 0.0 }
 0x7ca   : > { %v3189_v10 = vpop.f32.mrf.mxu0  ;;  %v3262_v6 = vpop.f32.mrf.mxu1 }
 0x7cb   : > { %v3190_v8 = vadd.f32 %v3189_v10, %v3085_v37  ;;  %v3263_v39 = vadd.f32 %v3262_v6, %v3085_v37  ;;  %v3295_v1 = vmax.f32 %v3188_v59, 0.0  ;;  %v3297_v37 = vmax.f32 %v3261_v9, 0.0 }
 0x7cc   : > { %v3193_v38 = vpop.f32.mrf.mxu0  ;;  %v3266_v15 = vpop.f32.mrf.mxu1 }
 0x7cd   : > { %v3194_v23 = vadd.f32 %v3193_v38, %v3090_v49  ;;  %v3267_v51 = vadd.f32 %v3266_v15, %v3090_v49  ;;  %v3296_v13 = vmax.f32 %v3190_v8, 0.0  ;;  %v3298_v34 = vmax.f32 %v3263_v39, 0.0 }
 0x7ce   : > { %v3195_v30 = vpop.f32.mrf.mxu0  ;;  %v3268_v32 = vpop.f32.mrf.mxu1  ;;  %v3288_v38 = vmax.f32 %v5199_v57, 0.0  ;;  %v3290_v15 = vmax.f32 %v5201_v40, 0.0  ;;  %v3293_v8 = vmax.f32 %v3257_v46, 0.0  ;;  %v3168_v39 = vadd.f32 %v5163_v20, %v5175_v27 }
 0x7cf   : > { %v3196_v5 = vadd.f32 %v3195_v30, %v3090_v49  ;;  %v3269_v47 = vadd.f32 %v3268_v32, %v3090_v49  ;;  %v3299_v61 = vmax.f32 %v3194_v23, 0.0  ;;  %v3301_v17 = vmax.f32 %v3267_v51, 0.0 }
 0x7d0   : > { %v3197_v48 = vpop.f32.mrf.mxu0  ;;  %v3270_v0 = vpop.f32.mrf.mxu1  ;;  %v3294_v49 = vmax.f32 %v3259_v63, 0.0  ;;  %v3316_v30 = vpack.c.bf16 %v3296_v13, %v3292_v7  ;;  %v3241_v57 = vadd.f32 %v5165_v26, %v5175_v27  ;;  %v3284_v40 = vmax.f32 %v5190_v52, 0.0 }
 0x7d1   : > { %v3198_v24 = vadd.f32 %v3197_v48, %v3095_v35  ;;  %v3271_v42 = vadd.f32 %v3270_v0, %v3095_v35  ;;  %v3300_v55 = vmax.f32 %v3196_v5, 0.0  ;;  %v3302_v29 = vmax.f32 %v3269_v47, 0.0 }
 0x7d2   : > { %v3199_v19 = vpop.f32.mrf.mxu0  ;;  %v3272_v45 = vpop.f32.mrf.mxu1  ;;  %v3318_v32 = vpack.c.bf16 %v3298_v34, %v3294_v49  ;;  %v3286_v48 = vmax.f32 %v5193_v21, 0.0  ;;  %v3315_v33 = vpack.c.bf16 %v3295_v1, %v3291_v16  ;;  %v3317_v0 = vpack.c.bf16 %v3297_v37, %v3293_v8 }
 0x7d3   : > { %v3200_v60 = vadd.f32 %v3199_v19, %v3095_v35  ;;  %v3273_v58 = vadd.f32 %v3272_v45, %v3095_v35  ;;  %v3303_v3 = vmax.f32 %v3198_v24, 0.0  ;;  %v3305_v11 = vmax.f32 %v3271_v42, 0.0  ;;  %v3328_v45 = vpop.permute.xlu0 %3327 }
 0x7d4   : > { %v3280_v5 = vmax.f32 %v5184_v2, 0.0  ;;  %v3282_v47 = vmax.f32 %v5187_v25, 0.0  ;;  %v3312_v20 = vpack.c.bf16 %v3288_v38, %v3284_v40  ;;  %v3314_v24 = vpack.c.bf16 %v3290_v15, %v3286_v48 }
 0x7d5   : > { %v3304_v53 = vmax.f32 %v3200_v60, 0.0  ;;  %v3306_v22 = vmax.f32 %v3273_v58, 0.0  ;;  %v3319_v4 = vpack.c.bf16 %v3303_v3, %v3299_v61  ;;  %v3321_v35 = vpack.c.bf16 %v3305_v11, %v3301_v17 }
 0x7d6   : > { %v3164_v26 = vadd.f32 %v5159_v14, %v5173_v31  ;;  %v3237_v27 = vadd.f32 %v5161_v36, %v5173_v31  ;;  %v3283_v52 = vmax.f32 %v3174_v41, 0.0  ;;  %v3285_v21 = vmax.f32 %v3247_v56, 0.0 }
 0x7d7   : > { %v3320_v10 = vpack.c.bf16 %v3304_v53, %v3300_v55  ;;  %v3322_v6 = vpack.c.bf16 %v3306_v22, %v3302_v29  ;;  %v3279_v2 = vmax.f32 %v3168_v39, 0.0  ;;  %v3281_v25 = vmax.f32 %v3241_v57, 0.0 }
 0x7d8   : > { %v3311_v42 = vpack.c.bf16 %v3287_v62, %v3283_v52  ;;  %v3313_v44 = vpack.c.bf16 %v3289_v50, %v3285_v21  ;;  %v3308_v63 = vpack.c.bf16 %v3280_v5, %v3276_v54  ;;  %v3310_v23 = vpack.c.bf16 %v3282_v47, %v3278_v43 }
 0x7d9   : > { %3341 = vmatprep.subr.bf16.mxu0 %v3320_v10  ;;  %3382 = vmatprep.subr.bf16.mxu1 %v3322_v6  ;;  %v3275_v14 = vmax.f32 %v3164_v26, 0.0  ;;  %v3277_v51 = vmax.f32 %v3237_v27, 0.0 }
 0x7da   : > { %3342 = vmatpush1.bf16.msra.mxu0 %v3319_v4  ;;  %3383 = vmatpush1.bf16.msra.mxu1 %v3321_v35 }
 0x7db   : > { %3343 = vmatprep.subr.bf16.mxu0 %v3316_v30  ;;  %3384 = vmatprep.subr.bf16.mxu1 %v3318_v32  ;;  %v3307_v36 = vpack.c.bf16 %v3279_v2, %v3275_v14  ;;  %v3309_v31 = vpack.c.bf16 %v3281_v25, %v3277_v51 }
 0x7de   : > { %3344 = vmatpush1.bf16.msra.mxu0 %v3315_v33  ;;  %3385 = vmatpush1.bf16.msra.mxu1 %v3317_v0 }
 0x7df   : > { %3345 = vmatprep.subr.bf16.mxu0 %v3312_v20  ;;  %3386 = vmatprep.subr.bf16.mxu1 %v3314_v24 }
 0x7e2   : > { %3346 = vmatpush1.bf16.msra.mxu0 %v3311_v42  ;;  %3387 = vmatpush1.bf16.msra.mxu1 %v3313_v44 }
 0x7e3   : > { %3347 = vmatprep.subr.bf16.mxu0 %v3308_v63  ;;  %3388 = vmatprep.subr.bf16.mxu1 %v3310_v23 }
 0x7e6   : > { %3348 = vmatpush1.bf16.msra.mxu0 %v3307_v36  ;;  %3389 = vmatpush1.bf16.msra.mxu1 %v3309_v31 }
 0x7e9   : > { %3668 = vmatmul.mubr.msk.bf16.vlgmr.msra.gmra.mxu0 %vm1296_vm3, %v3323_v18  ;;  %3669 = vmatmul.mubr.msk.bf16.vlgmr.msra.gmra.mxu1 %vm1296_vm3, %v3323_v18 }
 0x8a9   : > { %v3367_v12 = vpop.f32.mrf.mxu0  ;;  %v3408_v19 = vpop.f32.mrf.mxu1 }
 0x8aa   : > { %v3368_v60 = vadd.f32 %v3367_v12, %v3328_v45  ;;  %v3409_v58 = vadd.f32 %v3408_v19, %v3328_v45 }
 0x8ab   : > { %v3369_v59 = vpop.f32.mrf.mxu0  ;;  %v3410_v9 = vpop.f32.mrf.mxu1 }
 0x8ac   : > { %v3370_v13 = vadd.f32 %v3369_v59, %v3328_v45  ;;  %v3411_v34 = vadd.f32 %v3410_v9, %v3328_v45 }
 0x8ad   : > { %v3371_v3 = vpop.f32.mrf.mxu0  ;;  %v3412_v11 = vpop.f32.mrf.mxu1 }
 0x8ae   : > { %v3419_v55 = vcombine.low %v3368_v60, %v3370_v13  ;;  %v3420_v29 = vcombine.low %v3409_v58, %v3411_v34 }
 0x8af   : > { %v3372_v53 = vpop.f32.mrf.mxu0  ;;  %v3413_v22 = vpop.f32.mrf.mxu1 }
 0x8b0   : > { %3423 = vst [vmem:[%s694_s5] sm:$0x77] %v3419_v55  ;;  %3424 = vst [vmem:[%s694_s5 + $0x8] sm:$0x77] %v3420_v29 }
 0x8b1 PF: > { %s31_s26 = sadd.s32 1, %s3859_s26   ;;  %s5421_s2 = sld [smem:[#allocation2_spill]] }
 0x8b2   : > { %p28_p5 = scmp.ge.s32.totalorder %s31_s26, 4   ;;  %s5422_s25 = sld [smem:[#allocation3_spill]] }
 0x8b4   :  { %30 = sbr.rel (!%p28_p5) target bundleno = 7 (0x7), region = 134 }

</bundles_post_ra>
